<compile_context>
chip_gen: v7x
topology: tpu7x:2x2x1
jax: 0.10.0
libtpu: 0.0.40
codegen_flags: <defaults>
</compile_context>

<pallas_src>
import math

import jax
import jax.numpy as jnp
from jax.experimental import pallas as pl
from jax.experimental.pallas import tpu as pltpu


def _dyn_attn_kernel(
    q_ref, src_ref, trg_ref,                    # activations (block_b batches per step)
    wq_ref, bq_ref,                             # query_linear (1/sqrt(hid) folded)
    wsrc_ref, bsrc_ref,                         # fused src key|value projection (0.5 folded)
    wtrg_ref, btrg_ref,                         # fused trg key|value projection (0.5 folded)
    woq_ref, woc_ref, bo_ref,                   # split out_linear: query half / ctx half
    out_ref,
    qproj_ref, outq_ref,                        # VMEM scratch: per-batch projections
    skey_ref, sval_ref, tkey_ref, tval_ref,
):
    Bt, L, H = q_ref.shape
    _, S, F = src_ref.shape
    _, T, _ = trg_ref.shape
    hid = wq_ref.shape[1]
    out_dim = woq_ref.shape[1]
    cd = wq_ref.dtype                           # MXU input dtype (f32 or bf16)
    td = skey_ref.dtype                         # pairwise (broadcast-add + tanh) dtype

    # ---- stage 1: fat fused projections over all Bt batches at once (MXU) ----
    q_flat = q_ref[...].reshape(Bt * L, H)
    q_all = jnp.dot(q_flat, wq_ref[...],
                    preferred_element_type=jnp.float32) + bq_ref[...]          # (Bt*L, hid)
    qproj_ref[...] = q_all.astype(cd).reshape(Bt, L, hid)
    # query-side half of the output projection, bias folded in once
    outq_ref[...] = (jnp.dot(q_flat, woq_ref[...],
                             preferred_element_type=jnp.float32)
                     + bo_ref[...]).reshape(Bt, L, out_dim)                    # (Bt, L, out)

    s_all = jnp.dot(src_ref[...].reshape(Bt * S, F), wsrc_ref[...],
                    preferred_element_type=jnp.float32) + bsrc_ref[...]        # (Bt*S, 2*hid)
    skey_ref[...] = s_all[:, :hid].astype(td).reshape(Bt, S, hid)
    sval_ref[...] = s_all[:, hid:].astype(td).reshape(Bt, S, hid)

    t_all = jnp.dot(trg_ref[...].reshape(Bt * T, F), wtrg_ref[...],
                    preferred_element_type=jnp.float32) + btrg_ref[...]        # (Bt*T, 2*hid)
    tkey_ref[...] = t_all[:, :hid].astype(td).reshape(Bt, T, hid)
    tval_ref[...] = t_all[:, hid:].astype(td).reshape(Bt, T, hid)

    woc = woc_ref[...]                          # hoisted out of the batch loop

    # ---- stage 2: per-batch pairwise attention; fori_loop bounds live ranges ----
    def body(b, carry):
        # rel_key[t, s, :] = tanh((s_key[s] + t_key[t]) / 2); the /2 is folded into
        # the weights/biases. Produced directly in `td` (bf16 on v6e/v7x).
        rel_key = jnp.tanh(tkey_ref[b][:, None, :] + skey_ref[b][None, :, :])  # (T, S, hid)
        # scores contract over hid only (de-padded); 1/sqrt(hid) already in wq.
        scores = jax.lax.dot_general(
            qproj_ref[b], rel_key.reshape(T * S, hid).astype(cd),
            dimension_numbers=(((1,), (1,)), ((), ())),
            preferred_element_type=jnp.float32)                                # (L, T*S)

        # softmax over the flattened (t*s) pair axis
        m = jnp.max(scores, axis=-1, keepdims=True)
        e = jnp.exp(scores - m)
        w = e * pl.reciprocal(jnp.sum(e, axis=-1, keepdims=True), approx=True)

        rel_val = jnp.tanh(tval_ref[b][:, None, :] + sval_ref[b][None, :, :])  # (T, S, hid)
        ctx = jnp.dot(w.astype(cd), rel_val.reshape(T * S, hid).astype(cd),
                      preferred_element_type=jnp.float32)                      # (L, hid)

        outb = outq_ref[b] + jnp.dot(ctx.astype(cd), woc,
                                     preferred_element_type=jnp.float32)       # (L, out)
        out_ref[b] = jnp.maximum(outb, 0.0).astype(out_ref.dtype)              # ReLU
        return carry

    jax.lax.fori_loop(0, Bt, body, 0)


def prepare_params(params):
    """One-time host-side weight prep: fuse key/value projections, fold the
    1/sqrt(hid) and 0.5 scales into weights/biases, split the out projection."""
    hid = params["wq"].shape[1]
    h = params["wq"].shape[0]
    scale = 1.0 / math.sqrt(hid)

    wq = params["wq"] * scale                                        # (H, hid)
    bq = params["bq"] * scale                                        # (1, hid)

    wsrc = jnp.concatenate([params["ws"], params["wsv"]], axis=1) * 0.5   # (F, 2*hid)
    bsrc = jnp.concatenate([params["bs"], params["bsv"]], axis=1) * 0.5   # (1, 2*hid)
    wtrg = jnp.concatenate([params["wt"], params["wtv"]], axis=1) * 0.5   # (F, 2*hid)
    btrg = jnp.concatenate([params["bt"], params["btv"]], axis=1) * 0.5   # (1, 2*hid)

    wo_q = params["wo"][:h]                                          # (H, out)
    wo_c = params["wo"][h:]                                          # (hid, out)

    return dict(wq=wq, bq=bq, wsrc=wsrc, bsrc=bsrc, wtrg=wtrg, btrg=btrg,
                wo_q=wo_q, wo_c=wo_c, bo=params["bo"])


def _pick_block_b(b, *, l, s, t, h, f, hid, out_dim, cd_size, td_size,
                  vmem_budget_bytes=40 << 20, min_grid=2):
    """Largest divisor of b whose per-step VMEM estimate fits the budget,
    capped at b//min_grid so the grid keeps >=2 steps (v7x has 2 TensorCores)."""
    # Bytes that scale with block_b: double-buffered I/O tiles + projection scratch.
    per_batch = (
        2 * (l * h + (s + t) * f) * cd_size          # input tiles (x2 pipeline buffers)
        + 2 * l * out_dim * 4                        # output tile (x2 pipeline buffers)
        + l * hid * cd_size + l * out_dim * 4        # qproj / outq scratch
        + 2 * (s + t) * hid * td_size                # key/val scratch
        + (s + t) * 2 * hid * 4                      # transient f32 fused projections
    )
    # Bytes independent of block_b: resident weights (x2 buffers) + one batch's
    # pairwise live set (rel_key + rel_val (+ MXU-dtype copies) + scores/softmax).
    weight_bytes = 2 * ((h * hid + 2 * f * 2 * hid + h * out_dim + hid * out_dim) * cd_size
                        + (5 * hid + out_dim) * 4)
    pair_bytes = 2 * t * s * hid * td_size
    if td_size != cd_size:
        pair_bytes += 2 * t * s * hid * cd_size
    pair_bytes += 2 * l * t * s * 4
    avail = vmem_budget_bytes - weight_bytes - pair_bytes
    cap = max(1, int(avail // per_batch)) if avail > 0 else 1
    if b >= min_grid:
        cap = min(cap, b // min_grid)
    for cand in range(max(1, min(b, cap)), 0, -1):
        if b % cand == 0:
            return cand
    return 1


def dynamic_attention_51(query, src, trg, prepared, *, block_b=None,
                         compute_dtype=jnp.float32, tanh_dtype=None,
                         vmem_budget_bytes=40 << 20):
    """Fused DynamicAttention51 forward.

    compute_dtype: MXU input dtype (bf16 recommended on v6e/v7x, f32 or bf16 on v5e).
    tanh_dtype:    dtype of the pairwise broadcast-add + tanh (defaults to
                   compute_dtype; pass jnp.float32 on v5e, which has no bf16 VPU/EUP).
    """
    out_dtype = query.dtype
    b, l, h = query.shape
    _, s, f = src.shape
    _, t, _ = trg.shape
    hid = prepared["wq"].shape[1]
    out_dim = prepared["wo_q"].shape[1]

    cd = jnp.dtype(compute_dtype)
    td = jnp.dtype(tanh_dtype) if tanh_dtype is not None else cd

    if block_b is None:
        block_b = _pick_block_b(b, l=l, s=s, t=t, h=h, f=f, hid=hid, out_dim=out_dim,
                                cd_size=cd.itemsize, td_size=td.itemsize,
                                vmem_budget_bytes=vmem_budget_bytes)
    assert b % block_b == 0, "batch must be divisible by block_b"
    grid = (b // block_b,)

    qx, sx, tx = query.astype(cd), src.astype(cd), trg.astype(cd)
    weights = [
        prepared["wq"].astype(cd),   prepared["bq"].astype(jnp.float32),
        prepared["wsrc"].astype(cd), prepared["bsrc"].astype(jnp.float32),
        prepared["wtrg"].astype(cd), prepared["btrg"].astype(jnp.float32),
        prepared["wo_q"].astype(cd), prepared["wo_c"].astype(cd),
        prepared["bo"].astype(jnp.float32),
    ]

    def full_spec(arr):
        return pl.BlockSpec(arr.shape, lambda i: (0,) * arr.ndim)

    grid_spec = pltpu.PrefetchScalarGridSpec(
        num_scalar_prefetch=0,
        grid=grid,
        in_specs=[
            pl.BlockSpec((block_b, l, h), lambda i: (i, 0, 0)),
            pl.BlockSpec((block_b, s, f), lambda i: (i, 0, 0)),
            pl.BlockSpec((block_b, t, f), lambda i: (i, 0, 0)),
            *[full_spec(w) for w in weights],
        ],
        out_specs=pl.BlockSpec((block_b, l, out_dim), lambda i: (i, 0, 0)),
        scratch_shapes=[
            pltpu.VMEM((block_b, l, hid), cd),            # q projection
            pltpu.VMEM((block_b, l, out_dim), jnp.float32),  # query-half of out proj
            pltpu.VMEM((block_b, s, hid), td),            # src keys
            pltpu.VMEM((block_b, s, hid), td),            # src values
            pltpu.VMEM((block_b, t, hid), td),            # trg keys
            pltpu.VMEM((block_b, t, hid), td),            # trg values
        ],
    )

    # advisory cost estimate so XLA schedules neighbours sensibly
    flops = 2 * b * (l * h * hid + l * h * out_dim + (s + t) * f * 2 * hid
                     + 2 * l * t * s * hid + l * hid * out_dim)
    transcendentals = b * (2 * t * s * hid + l * t * s)
    bytes_accessed = int(
        qx.size * cd.itemsize + sx.size * cd.itemsize + tx.size * cd.itemsize
        + b * l * out_dim * jnp.dtype(out_dtype).itemsize
        + sum(int(w.size) * w.dtype.itemsize for w in weights))

    return pl.pallas_call(
        _dyn_attn_kernel,
        out_shape=jax.ShapeDtypeStruct((b, l, out_dim), out_dtype),
        grid_spec=grid_spec,
        compiler_params=pltpu.CompilerParams(
            dimension_semantics=("parallel",),
            vmem_limit_bytes=48 * 1024 * 1024),   # > 32 MiB default, < v7x 64 MiB
        cost_estimate=pl.CostEstimate(flops=flops,
                                      transcendentals=transcendentals,
                                      bytes_accessed=bytes_accessed),
    )(qx, sx, tx, *weights)


def _reference(query, src, trg, p):
    """Pure-JAX replica of the PyTorch forward (for correctness checking)."""
    hid = p["wq"].shape[1]
    q = query @ p["wq"] + p["bq"][0]
    s_key = src @ p["ws"] + p["bs"][0]
    t_key = trg @ p["wt"] + p["bt"][0]
    rel_key = jnp.tanh((s_key[:, None, :, :] + t_key[:, :, None, :]) / 2)   # (b, t, s, hid)
    weight = jnp.einsum("ijk,istk->ijst", q, rel_key) / math.sqrt(hid)
    b, l = weight.shape[0], weight.shape[1]
    weight = jax.nn.softmax(weight.reshape(b, l, -1), axis=-1).reshape(weight.shape)
    s_val = src @ p["wsv"] + p["bsv"][0]
    t_val = trg @ p["wtv"] + p["btv"][0]
    rel_val = jnp.tanh((s_val[:, None, :, :] + t_val[:, :, None, :]) / 2)
    ctx = jnp.einsum("ijst,istk->ijk", weight, rel_val)
    x = jnp.concatenate([query, ctx], axis=-1)
    return jax.nn.relu(x @ p["wo"] + p["bo"][0])


if __name__ == "__main__":
    # Small shapes consistent with the module's forward (S == T, as the module requires):
    B, L, S, T = 4, 8, 8, 8
    QUERY_DIM, FEAT_DIM, HID_DIM = 32, 16, 32
    OUT_DIM = HID_DIM  # out_dim defaults to hid_dim

    key = jax.random.PRNGKey(0)
    keys = jax.random.split(key, 16)

    def lin(kw, kb, din, dout):
        bound = 1.0 / math.sqrt(din)
        w = jax.random.uniform(kw, (din, dout), jnp.float32, -bound, bound)
        b_ = jax.random.uniform(kb, (1, dout), jnp.float32, -bound, bound)
        return w, b_

    params = {}
    params["wq"], params["bq"] = lin(keys[0], keys[1], QUERY_DIM, HID_DIM)
    params["ws"], params["bs"] = lin(keys[2], keys[3], FEAT_DIM, HID_DIM)
    params["wt"], params["bt"] = lin(keys[4], keys[5], FEAT_DIM, HID_DIM)
    params["wsv"], params["bsv"] = lin(keys[6], keys[7], FEAT_DIM, HID_DIM)
    params["wtv"], params["btv"] = lin(keys[8], keys[9], FEAT_DIM, HID_DIM)
    params["wo"], params["bo"] = lin(keys[10], keys[11], HID_DIM + QUERY_DIM, OUT_DIM)

    query = jax.random.normal(keys[12], (B, L, QUERY_DIM), jnp.float32)
    src = jax.random.normal(keys[13], (B, S, FEAT_DIM), jnp.float32)
    trg = jax.random.normal(keys[14], (B, T, FEAT_DIM), jnp.float32)

    prepared = prepare_params(params)
    ref = _reference(query, src, trg, params)

    # f32 path; block_b auto-derived from the VMEM budget and capped at B//2
    # so the grid keeps >= 2 steps (both v7x TensorCores get work).
    out = dynamic_attention_51(query, src, trg, prepared)
    out = jax.block_until_ready(out)
    assert out.shape == (B, L, OUT_DIM)
    # tolerance accounts for the approx-reciprocal softmax denominator
    assert jnp.allclose(out, ref, rtol=2e-3, atol=2e-3), "f32 mismatch vs reference"

    # bf16 MXU + bf16 pairwise tanh path (v6e/v7x recommendation), f32 accumulation.
    # (On v5e pass tanh_dtype=jnp.float32 to keep elementwise math in f32.)
    out_bf16 = dynamic_attention_51(query, src, trg, prepared,
                                    compute_dtype=jnp.bfloat16)
    out_bf16 = jax.block_until_ready(out_bf16)
    assert jnp.allclose(out_bf16, ref, rtol=1e-1, atol=1e-1), "bf16 mismatch vs reference"

    print("KERNEL_OK")
</pallas_src>

<mosaic_0001>
module attributes {stable_mosaic.version = 11 : i64} {
  func.func @_dyn_attn_kernel(%arg0: i32, %arg1: memref<2x8x32xf32, #tpu.memory_space<vmem>>, %arg2: memref<2x8x16xf32, #tpu.memory_space<vmem>>, %arg3: memref<2x8x16xf32, #tpu.memory_space<vmem>>, %arg4: memref<32x32xf32, #tpu.memory_space<vmem>>, %arg5: memref<1x32xf32, #tpu.memory_space<vmem>>, %arg6: memref<16x64xf32, #tpu.memory_space<vmem>>, %arg7: memref<1x64xf32, #tpu.memory_space<vmem>>, %arg8: memref<16x64xf32, #tpu.memory_space<vmem>>, %arg9: memref<1x64xf32, #tpu.memory_space<vmem>>, %arg10: memref<32x32xf32, #tpu.memory_space<vmem>>, %arg11: memref<32x32xf32, #tpu.memory_space<vmem>>, %arg12: memref<1x32xf32, #tpu.memory_space<vmem>>, %arg13: memref<2x8x32xf32, #tpu.memory_space<vmem>>, %arg14: memref<2x8x32xf32, #tpu.memory_space<vmem>>, %arg15: memref<2x8x32xf32, #tpu.memory_space<vmem>>, %arg16: memref<2x8x32xf32, #tpu.memory_space<vmem>>, %arg17: memref<2x8x32xf32, #tpu.memory_space<vmem>>, %arg18: memref<2x8x32xf32, #tpu.memory_space<vmem>>, %arg19: memref<2x8x32xf32, #tpu.memory_space<vmem>>) attributes {dimension_semantics = [#tpu.dimension_semantics<parallel>], iteration_bounds = array<i64: 2>, scalar_prefetch = 0 : i64, scratch_operands = 6 : i64, tpu.core_type = #tpu.core_type<tc>, window_params = [{transform_indices = @transform_0, window_bounds = array<i64: 2, 8, 32>}, {transform_indices = @transform_1, window_bounds = array<i64: 2, 8, 16>}, {transform_indices = @transform_2, window_bounds = array<i64: 2, 8, 16>}, {pipeline_mode = #tpu.pipeline_mode<synchronous>, transform_indices = @transform_3, window_bounds = array<i64: 32, 32>}, {pipeline_mode = #tpu.pipeline_mode<synchronous>, transform_indices = @transform_4, window_bounds = array<i64: 1, 32>}, {pipeline_mode = #tpu.pipeline_mode<synchronous>, transform_indices = @transform_5, window_bounds = array<i64: 16, 64>}, {pipeline_mode = #tpu.pipeline_mode<synchronous>, transform_indices = @transform_6, window_bounds = array<i64: 1, 64>}, {pipeline_mode = #tpu.pipeline_mode<synchronous>, transform_indices = @transform_7, window_bounds = array<i64: 16, 64>}, {pipeline_mode = #tpu.pipeline_mode<synchronous>, transform_indices = @transform_8, window_bounds = array<i64: 1, 64>}, {pipeline_mode = #tpu.pipeline_mode<synchronous>, transform_indices = @transform_9, window_bounds = array<i64: 32, 32>}, {pipeline_mode = #tpu.pipeline_mode<synchronous>, transform_indices = @transform_10, window_bounds = array<i64: 32, 32>}, {pipeline_mode = #tpu.pipeline_mode<synchronous>, transform_indices = @transform_11, window_bounds = array<i64: 1, 32>}, {transform_indices = @transform_12, window_bounds = array<i64: 2, 8, 32>}]} {
    %c0 = arith.constant 0 : index
    %c0_0 = arith.constant 0 : index
    %c0_1 = arith.constant 0 : index
    %0 = vector.load %arg1[%c0, %c0_0, %c0_1] : memref<2x8x32xf32, #tpu.memory_space<vmem>>, vector<2x8x32xf32>
    %1 = vector.shape_cast %0 : vector<2x8x32xf32> to vector<16x32xf32>
    %c0_2 = arith.constant 0 : index
    %c0_3 = arith.constant 0 : index
    %2 = vector.load %arg4[%c0_2, %c0_3] : memref<32x32xf32, #tpu.memory_space<vmem>>, vector<32x32xf32>
    %cst = arith.constant dense<0.000000e+00> : vector<16x32xf32>
    %3 = tpu.matmul %1, %2, %cst {dimension_numbers = #tpu.dot_dimension_numbers<[1], [0], [0], [1], [0, 0, 1, 1], [], []>} : vector<16x32xf32>, vector<32x32xf32>, vector<16x32xf32> -> vector<16x32xf32>
    %c0_4 = arith.constant 0 : index
    %c0_5 = arith.constant 0 : index
    %4 = vector.load %arg5[%c0_4, %c0_5] : memref<1x32xf32, #tpu.memory_space<vmem>>, vector<1x32xf32>
    %5 = vector.broadcast %4 : vector<1x32xf32> to vector<16x32xf32>
    %6 = arith.addf %3, %5 : vector<16x32xf32>
    %7 = vector.shape_cast %6 : vector<16x32xf32> to vector<2x8x32xf32>
    %c0_6 = arith.constant 0 : index
    %c0_7 = arith.constant 0 : index
    %c0_8 = arith.constant 0 : index
    %8 = vector.load %arg14[%c0_6, %c0_7, %c0_8] : memref<2x8x32xf32, #tpu.memory_space<vmem>>, vector<2x8x32xf32>
    tpu.vector_store %arg14[%c0_6, %c0_7, %c0_8], %7 {strides = array<i32>} : memref<2x8x32xf32, #tpu.memory_space<vmem>>, vector<2x8x32xf32>,
    %c0_9 = arith.constant 0 : index
    %c0_10 = arith.constant 0 : index
    %9 = vector.load %arg10[%c0_9, %c0_10] : memref<32x32xf32, #tpu.memory_space<vmem>>, vector<32x32xf32>
    %cst_11 = arith.constant dense<0.000000e+00> : vector<16x32xf32>
    %10 = tpu.matmul %1, %9, %cst_11 {dimension_numbers = #tpu.dot_dimension_numbers<[1], [0], [0], [1], [0, 0, 1, 1], [], []>} : vector<16x32xf32>, vector<32x32xf32>, vector<16x32xf32> -> vector<16x32xf32>
    %c0_12 = arith.constant 0 : index
    %c0_13 = arith.constant 0 : index
    %11 = vector.load %arg12[%c0_12, %c0_13] : memref<1x32xf32, #tpu.memory_space<vmem>>, vector<1x32xf32>
    %12 = vector.broadcast %11 : vector<1x32xf32> to vector<16x32xf32>
    %13 = arith.addf %10, %12 : vector<16x32xf32>
    %14 = vector.shape_cast %13 : vector<16x32xf32> to vector<2x8x32xf32>
    %c0_14 = arith.constant 0 : index
    %c0_15 = arith.constant 0 : index
    %c0_16 = arith.constant 0 : index
    %15 = vector.load %arg15[%c0_14, %c0_15, %c0_16] : memref<2x8x32xf32, #tpu.memory_space<vmem>>, vector<2x8x32xf32>
    tpu.vector_store %arg15[%c0_14, %c0_15, %c0_16], %14 {strides = array<i32>} : memref<2x8x32xf32, #tpu.memory_space<vmem>>, vector<2x8x32xf32>,
    %c0_17 = arith.constant 0 : index
    %c0_18 = arith.constant 0 : index
    %c0_19 = arith.constant 0 : index
    %16 = vector.load %arg2[%c0_17, %c0_18, %c0_19] : memref<2x8x16xf32, #tpu.memory_space<vmem>>, vector<2x8x16xf32>
    %17 = vector.shape_cast %16 : vector<2x8x16xf32> to vector<16x16xf32>
    %c0_20 = arith.constant 0 : index
    %c0_21 = arith.constant 0 : index
    %18 = vector.load %arg6[%c0_20, %c0_21] : memref<16x64xf32, #tpu.memory_space<vmem>>, vector<16x64xf32>
    %cst_22 = arith.constant dense<0.000000e+00> : vector<16x64xf32>
    %19 = tpu.matmul %17, %18, %cst_22 {dimension_numbers = #tpu.dot_dimension_numbers<[1], [0], [0], [1], [0, 0, 1, 1], [], []>} : vector<16x16xf32>, vector<16x64xf32>, vector<16x64xf32> -> vector<16x64xf32>
    %c0_23 = arith.constant 0 : index
    %c0_24 = arith.constant 0 : index
    %20 = vector.load %arg7[%c0_23, %c0_24] : memref<1x64xf32, #tpu.memory_space<vmem>>, vector<1x64xf32>
    %21 = vector.broadcast %20 : vector<1x64xf32> to vector<16x64xf32>
    %22 = arith.addf %19, %21 : vector<16x64xf32>
    %23 = vector.extract_strided_slice %22 {offsets = [0, 0], sizes = [16, 32], strides = [1, 1]} : vector<16x64xf32> to vector<16x32xf32>
    %24 = vector.shape_cast %23 : vector<16x32xf32> to vector<2x8x32xf32>
    %c0_25 = arith.constant 0 : index
    %c0_26 = arith.constant 0 : index
    %c0_27 = arith.constant 0 : index
    %25 = vector.load %arg16[%c0_25, %c0_26, %c0_27] : memref<2x8x32xf32, #tpu.memory_space<vmem>>, vector<2x8x32xf32>
    tpu.vector_store %arg16[%c0_25, %c0_26, %c0_27], %24 {strides = array<i32>} : memref<2x8x32xf32, #tpu.memory_space<vmem>>, vector<2x8x32xf32>,
    %26 = vector.extract_strided_slice %22 {offsets = [0, 32], sizes = [16, 32], strides = [1, 1]} : vector<16x64xf32> to vector<16x32xf32>
    %27 = vector.shape_cast %26 : vector<16x32xf32> to vector<2x8x32xf32>
    %c0_28 = arith.constant 0 : index
    %c0_29 = arith.constant 0 : index
    %c0_30 = arith.constant 0 : index
    %28 = vector.load %arg17[%c0_28, %c0_29, %c0_30] : memref<2x8x32xf32, #tpu.memory_space<vmem>>, vector<2x8x32xf32>
    tpu.vector_store %arg17[%c0_28, %c0_29, %c0_30], %27 {strides = array<i32>} : memref<2x8x32xf32, #tpu.memory_space<vmem>>, vector<2x8x32xf32>,
    %c0_31 = arith.constant 0 : index
    %c0_32 = arith.constant 0 : index
    %c0_33 = arith.constant 0 : index
    %29 = vector.load %arg3[%c0_31, %c0_32, %c0_33] : memref<2x8x16xf32, #tpu.memory_space<vmem>>, vector<2x8x16xf32>
    %30 = vector.shape_cast %29 : vector<2x8x16xf32> to vector<16x16xf32>
    %c0_34 = arith.constant 0 : index
    %c0_35 = arith.constant 0 : index
    %31 = vector.load %arg8[%c0_34, %c0_35] : memref<16x64xf32, #tpu.memory_space<vmem>>, vector<16x64xf32>
    %cst_36 = arith.constant dense<0.000000e+00> : vector<16x64xf32>
    %32 = tpu.matmul %30, %31, %cst_36 {dimension_numbers = #tpu.dot_dimension_numbers<[1], [0], [0], [1], [0, 0, 1, 1], [], []>} : vector<16x16xf32>, vector<16x64xf32>, vector<16x64xf32> -> vector<16x64xf32>
    %c0_37 = arith.constant 0 : index
    %c0_38 = arith.constant 0 : index
    %33 = vector.load %arg9[%c0_37, %c0_38] : memref<1x64xf32, #tpu.memory_space<vmem>>, vector<1x64xf32>
    %34 = vector.broadcast %33 : vector<1x64xf32> to vector<16x64xf32>
    %35 = arith.addf %32, %34 : vector<16x64xf32>
    %36 = vector.extract_strided_slice %35 {offsets = [0, 0], sizes = [16, 32], strides = [1, 1]} : vector<16x64xf32> to vector<16x32xf32>
    %37 = vector.shape_cast %36 : vector<16x32xf32> to vector<2x8x32xf32>
    %c0_39 = arith.constant 0 : index
    %c0_40 = arith.constant 0 : index
    %c0_41 = arith.constant 0 : index
    %38 = vector.load %arg18[%c0_39, %c0_40, %c0_41] : memref<2x8x32xf32, #tpu.memory_space<vmem>>, vector<2x8x32xf32>
    tpu.vector_store %arg18[%c0_39, %c0_40, %c0_41], %37 {strides = array<i32>} : memref<2x8x32xf32, #tpu.memory_space<vmem>>, vector<2x8x32xf32>,
    %39 = vector.extract_strided_slice %35 {offsets = [0, 32], sizes = [16, 32], strides = [1, 1]} : vector<16x64xf32> to vector<16x32xf32>
    %40 = vector.shape_cast %39 : vector<16x32xf32> to vector<2x8x32xf32>
    %c0_42 = arith.constant 0 : index
    %c0_43 = arith.constant 0 : index
    %c0_44 = arith.constant 0 : index
    %41 = vector.load %arg19[%c0_42, %c0_43, %c0_44] : memref<2x8x32xf32, #tpu.memory_space<vmem>>, vector<2x8x32xf32>
    tpu.vector_store %arg19[%c0_42, %c0_43, %c0_44], %40 {strides = array<i32>} : memref<2x8x32xf32, #tpu.memory_space<vmem>>, vector<2x8x32xf32>,
    %c0_45 = arith.constant 0 : index
    %c0_46 = arith.constant 0 : index
    %42 = vector.load %arg11[%c0_45, %c0_46] : memref<32x32xf32, #tpu.memory_space<vmem>>, vector<32x32xf32>
    %c0_i32 = arith.constant 0 : i32
    %c2_i32 = arith.constant 2 : i32
    %43 = arith.addi %c0_i32, %c2_i32 : i32
    %c1_i32 = arith.constant 1 : i32
    scf.for %arg20 = %c0_i32 to %43 step %c1_i32  : i32 {
      %44 = arith.index_cast %arg20 : i32 to index
      %c0_48 = arith.constant 0 : index
      %c0_49 = arith.constant 0 : index
      %45 = vector.load %arg18[%44, %c0_48, %c0_49] : memref<2x8x32xf32, #tpu.memory_space<vmem>>, vector<1x8x32xf32>
      %46 = vector.shape_cast %45 : vector<1x8x32xf32> to vector<8x32xf32>
      %47 = vector.shape_cast %46 : vector<8x32xf32> to vector<8x1x32xf32>
      %48 = arith.index_cast %arg20 : i32 to index
      %c0_50 = arith.constant 0 : index
      %c0_51 = arith.constant 0 : index
      %49 = vector.load %arg16[%48, %c0_50, %c0_51] : memref<2x8x32xf32, #tpu.memory_space<vmem>>, vector<1x8x32xf32>
      %50 = vector.shape_cast %49 : vector<1x8x32xf32> to vector<8x32xf32>
      %51 = vector.shape_cast %50 : vector<8x32xf32> to vector<1x8x32xf32>
      %52 = vector.broadcast %47 : vector<8x1x32xf32> to vector<8x8x32xf32>
      %53 = vector.broadcast %51 : vector<1x8x32xf32> to vector<8x8x32xf32>
      %54 = arith.addf %52, %53 : vector<8x8x32xf32>
      %55 = math.tanh %54 : vector<8x8x32xf32>
      %56 = arith.index_cast %arg20 : i32 to index
      %c0_52 = arith.constant 0 : index
      %c0_53 = arith.constant 0 : index
      %57 = vector.load %arg14[%56, %c0_52, %c0_53] : memref<2x8x32xf32, #tpu.memory_space<vmem>>, vector<1x8x32xf32>
      %58 = vector.shape_cast %57 : vector<1x8x32xf32> to vector<8x32xf32>
      %59 = vector.shape_cast %55 : vector<8x8x32xf32> to vector<64x32xf32>
      %cst_54 = arith.constant dense<0.000000e+00> : vector<8x64xf32>
      %60 = tpu.matmul %58, %59, %cst_54 {dimension_numbers = #tpu.dot_dimension_numbers<[1], [1], [0], [0], [0, 0, 1, 0], [], []>} : vector<8x32xf32>, vector<64x32xf32>, vector<8x64xf32> -> vector<8x64xf32>
      %cst_55 = arith.constant dense<0xFF800000> : vector<8xf32>
      %61 = vector.multi_reduction <maximumf>, %60, %cst_55 [1] : vector<8x64xf32> to vector<8xf32>
      %62 = vector.shape_cast %61 : vector<8xf32> to vector<8x1xf32>
      %63 = vector.broadcast %62 : vector<8x1xf32> to vector<8x64xf32>
      %64 = arith.subf %60, %63 : vector<8x64xf32>
      %65 = math.exp %64 : vector<8x64xf32>
      %cst_56 = arith.constant dense<0.000000e+00> : vector<8xf32>
      %66 = vector.multi_reduction <add>, %65, %cst_56 [1] : vector<8x64xf32> to vector<8xf32>
      %67 = vector.shape_cast %66 : vector<8xf32> to vector<8x1xf32>
      %68 = tpu.reciprocal %67 {approx = true} : vector<8x1xf32> -> vector<8x1xf32>
      %69 = vector.broadcast %68 : vector<8x1xf32> to vector<8x64xf32>
      %70 = arith.mulf %65, %69 : vector<8x64xf32>
      %71 = arith.index_cast %arg20 : i32 to index
      %c0_57 = arith.constant 0 : index
      %c0_58 = arith.constant 0 : index
      %72 = vector.load %arg19[%71, %c0_57, %c0_58] : memref<2x8x32xf32, #tpu.memory_space<vmem>>, vector<1x8x32xf32>
      %73 = vector.shape_cast %72 : vector<1x8x32xf32> to vector<8x32xf32>
      %74 = vector.shape_cast %73 : vector<8x32xf32> to vector<8x1x32xf32>
      %75 = arith.index_cast %arg20 : i32 to index
      %c0_59 = arith.constant 0 : index
      %c0_60 = arith.constant 0 : index
      %76 = vector.load %arg17[%75, %c0_59, %c0_60] : memref<2x8x32xf32, #tpu.memory_space<vmem>>, vector<1x8x32xf32>
      %77 = vector.shape_cast %76 : vector<1x8x32xf32> to vector<8x32xf32>
      %78 = vector.shape_cast %77 : vector<8x32xf32> to vector<1x8x32xf32>
      %79 = vector.broadcast %74 : vector<8x1x32xf32> to vector<8x8x32xf32>
      %80 = vector.broadcast %78 : vector<1x8x32xf32> to vector<8x8x32xf32>
      %81 = arith.addf %79, %80 : vector<8x8x32xf32>
      %82 = math.tanh %81 : vector<8x8x32xf32>
      %83 = vector.shape_cast %82 : vector<8x8x32xf32> to vector<64x32xf32>
      %cst_61 = arith.constant dense<0.000000e+00> : vector<8x32xf32>
      %84 = tpu.matmul %70, %83, %cst_61 {dimension_numbers = #tpu.dot_dimension_numbers<[1], [0], [0], [1], [0, 0, 1, 1], [], []>} : vector<8x64xf32>, vector<64x32xf32>, vector<8x32xf32> -> vector<8x32xf32>
      %85 = arith.index_cast %arg20 : i32 to index
      %c0_62 = arith.constant 0 : index
      %c0_63 = arith.constant 0 : index
      %86 = vector.load %arg15[%85, %c0_62, %c0_63] : memref<2x8x32xf32, #tpu.memory_space<vmem>>, vector<1x8x32xf32>
      %87 = vector.shape_cast %86 : vector<1x8x32xf32> to vector<8x32xf32>
      %cst_64 = arith.constant dense<0.000000e+00> : vector<8x32xf32>
      %88 = tpu.matmul %84, %42, %cst_64 {dimension_numbers = #tpu.dot_dimension_numbers<[1], [0], [0], [1], [0, 0, 1, 1], [], []>} : vector<8x32xf32>, vector<32x32xf32>, vector<8x32xf32> -> vector<8x32xf32>
      %89 = arith.addf %87, %88 : vector<8x32xf32>
      %cst_65 = arith.constant 0.000000e+00 : f32
      %90 = vector.broadcast %cst_65 : f32 to vector<8x32xf32>
      %91 = arith.maximumf %89, %90 : vector<8x32xf32>
      %92 = arith.index_cast %arg20 : i32 to index
      %c0_66 = arith.constant 0 : index
      %c0_67 = arith.constant 0 : index
      %93 = vector.load %arg13[%92, %c0_66, %c0_67] : memref<2x8x32xf32, #tpu.memory_space<vmem>>, vector<1x8x32xf32>
      %94 = vector.shape_cast %93 : vector<1x8x32xf32> to vector<8x32xf32>
      %95 = vector.shape_cast %91 : vector<8x32xf32> to vector<1x8x32xf32>
      tpu.vector_store %arg13[%92, %c0_66, %c0_67], %95 {strides = array<i32>} : memref<2x8x32xf32, #tpu.memory_space<vmem>>, vector<1x8x32xf32>,
    }
    %c2_i32_47 = arith.constant 2 : i32
    return
  }
  func.func @transform_0(%arg0: i32) -> (i32, i32, i32) {
    %c0_i32 = arith.constant 0 : i32
    %c0_i32_0 = arith.constant 0 : i32
    %c0_i32_1 = arith.constant 0 : i32
    return %arg0, %c0_i32, %c0_i32_0 : i32, i32, i32
  }
  func.func @transform_1(%arg0: i32) -> (i32, i32, i32) {
    %c0_i32 = arith.constant 0 : i32
    %c0_i32_0 = arith.constant 0 : i32
    %c0_i32_1 = arith.constant 0 : i32
    return %arg0, %c0_i32, %c0_i32_0 : i32, i32, i32
  }
  func.func @transform_2(%arg0: i32) -> (i32, i32, i32) {
    %c0_i32 = arith.constant 0 : i32
    %c0_i32_0 = arith.constant 0 : i32
    %c0_i32_1 = arith.constant 0 : i32
    return %arg0, %c0_i32, %c0_i32_0 : i32, i32, i32
  }
  func.func @transform_3(%arg0: i32) -> (i32, i32) {
    %c0_i32 = arith.constant 0 : i32
    %c0_i32_0 = arith.constant 0 : i32
    %c0_i32_1 = arith.constant 0 : i32
    return %c0_i32, %c0_i32_0 : i32, i32
  }
  func.func @transform_4(%arg0: i32) -> (i32, i32) {
    %c0_i32 = arith.constant 0 : i32
    %c0_i32_0 = arith.constant 0 : i32
    %c0_i32_1 = arith.constant 0 : i32
    return %c0_i32, %c0_i32_0 : i32, i32
  }
  func.func @transform_5(%arg0: i32) -> (i32, i32) {
    %c0_i32 = arith.constant 0 : i32
    %c0_i32_0 = arith.constant 0 : i32
    %c0_i32_1 = arith.constant 0 : i32
    return %c0_i32, %c0_i32_0 : i32, i32
  }
  func.func @transform_6(%arg0: i32) -> (i32, i32) {
    %c0_i32 = arith.constant 0 : i32
    %c0_i32_0 = arith.constant 0 : i32
    %c0_i32_1 = arith.constant 0 : i32
    return %c0_i32, %c0_i32_0 : i32, i32
  }
  func.func @transform_7(%arg0: i32) -> (i32, i32) {
    %c0_i32 = arith.constant 0 : i32
    %c0_i32_0 = arith.constant 0 : i32
    %c0_i32_1 = arith.constant 0 : i32
    return %c0_i32, %c0_i32_0 : i32, i32
  }
  func.func @transform_8(%arg0: i32) -> (i32, i32) {
    %c0_i32 = arith.constant 0 : i32
    %c0_i32_0 = arith.constant 0 : i32
    %c0_i32_1 = arith.constant 0 : i32
    return %c0_i32, %c0_i32_0 : i32, i32
  }
  func.func @transform_9(%arg0: i32) -> (i32, i32) {
    %c0_i32 = arith.constant 0 : i32
    %c0_i32_0 = arith.constant 0 : i32
    %c0_i32_1 = arith.constant 0 : i32
    return %c0_i32, %c0_i32_0 : i32, i32
  }
  func.func @transform_10(%arg0: i32) -> (i32, i32) {
    %c0_i32 = arith.constant 0 : i32
    %c0_i32_0 = arith.constant 0 : i32
    %c0_i32_1 = arith.constant 0 : i32
    return %c0_i32, %c0_i32_0 : i32, i32
  }
  func.func @transform_11(%arg0: i32) -> (i32, i32) {
    %c0_i32 = arith.constant 0 : i32
    %c0_i32_0 = arith.constant 0 : i32
    %c0_i32_1 = arith.constant 0 : i32
    return %c0_i32, %c0_i32_0 : i32, i32
  }
  func.func @transform_12(%arg0: i32) -> (i32, i32, i32) {
    %c0_i32 = arith.constant 0 : i32
    %c0_i32_0 = arith.constant 0 : i32
    %c0_i32_1 = arith.constant 0 : i32
    return %arg0, %c0_i32, %c0_i32_0 : i32, i32, i32
  }
}

</mosaic_0001>

<bundles_post_ra>
// kernel: tpu_custom_call.1
= control target key start
LH: loop header
LB: loop body
LE: loop exit
PB: predicated region body
PF: predicated region fallthrough
CT: control target
= control target key end

     0   :  { %s3041_s0 = inlined_call_operand.hbm [shape: f32[4,8,32], index: 0, kind: input, shape index: {}]   ;;  %s3042_s1 = inlined_call_operand.hbm [shape: f32[4,8,16], index: 1, kind: input, shape index: {}]   ;;  %s3043_s2 = inlined_call_operand.hbm [shape: f32[4,8,16], index: 2, kind: input, shape index: {}]   ;;  %s3044_s3 = inlined_call_operand.hbm [shape: f32[32,32], index: 3, kind: input, shape index: {}]   ;;  %s3045_s4 = inlined_call_operand.vmem [shape: f32[1,32], index: 4, kind: input, shape index: {}]   ;;  %s3046_s5 = inlined_call_operand.hbm [shape: f32[16,64], index: 5, kind: input, shape index: {}]   ;;  %s3047_s6 = inlined_call_operand.vmem [shape: f32[1,64], index: 6, kind: input, shape index: {}]   ;;  %s3048_s7 = inlined_call_operand.hbm [shape: f32[16,64], index: 7, kind: input, shape index: {}]   ;;  %s3049_s8 = inlined_call_operand.hbm [shape: f32[1,64], index: 8, kind: input, shape index: {}]   ;;  %s3050_s9 = inlined_call_operand.vmem [shape: f32[32,32], index: 9, kind: input, shape index: {}]   ;;  %s3051_s10 = inlined_call_operand.hbm [shape: f32[32,32], index: 10, kind: input, shape index: {}]   ;;  %s3052_s11 = inlined_call_operand.vmem [shape: f32[1,32], index: 11, kind: input, shape index: {}]   ;;  %s3053_s12 = inlined_call_operand.hbm [shape: f32[4,8,32], index: 12, kind: output, shape index: {}]  }
   0x1   :  { %3082 = sst [smem:[#allocation36_spill]] %s3042_s1 }
   0x2   :  { %3083 = sst [smem:[#allocation37_spill]] %s3044_s3 }
   0x3   :  { %3084 = sst [smem:[#allocation38_spill]] %s3045_s4 }
   0x4   :  { %3085 = sst [smem:[#allocation39_spill]] %s3047_s6 }
   0x5   :  { %3086 = sst [smem:[#allocation40_spill]] %s3048_s7 }
   0x6   :  { %3087 = sst [smem:[#allocation41_spill]] %s3050_s9 }
   0x7   :  { %3088 = sst [smem:[#allocation42_spill]] %s3052_s11 }
   0x8   :  { %3089 = sst [smem:[#allocation43_spill]] %s3053_s12 }
   0x9   :  { %17 = vsyncpa [#allocation9], 0 }
   0xa   :  { %19 = vsyncpa [#allocation9 + $0x1], 0 }
   0xb   :  { %20 = vsyncpa [#allocation12], 0 }
   0xc   :  { %22 = vsyncpa [#allocation12 + $0x1], 0 }
   0xd   :  { %23 = vsyncpa [#allocation15], 0 }
   0xe   :  { %24 = vsyncpa [#allocation18], 0 }
   0xf   :  { %25 = vsyncpa [#allocation21], 0 }
  0x10   :  { %26 = vsyncpa [#allocation10], 0 }
  0x11   :  { %28 = vsyncpa [#allocation10 + $0x1], 0  ;;  %s2482_s21 = smov 0   ;;  %s2484_s22 = smov 0  }
  0x12   :  { %s2486_s23 = smov 0   ;;  %s2488_s24 = smov 0  }
  0x13 LB: > { %3090 = sst [smem:[#allocation29_spill]] %s2381_s21  ;;  %s2399_s25 = smov [#allocation14]   ;;  %s2393_s24 = sphi %s2488_s24, %s3140_s24   ;;  %s2389_s23 = sphi %s2486_s23, %s3144_s23   ;;  %s2385_s22 = sphi %s2484_s22, %s3143_s22   ;;  %s2381_s21 = sphi %s2482_s21, %s3142_s21  }
  0x14   : > { %3091 = sst [smem:[#allocation30_spill]] %s2393_s24  ;;  %s344_s26 = sshll.u32 %s2399_s25, 4  ;;  %s2509_s26 = int_to_ptr.vmem [resolvable:$true] %s344_s26 }
  0x15   : > { %s2503_s27 = sadd.s32 4294967295, %s2393_s24   ;;  %p1670_p0 = scmp.ge.s32.totalorder %s2393_s24, 1 }
  0x16   : > { %3092 = sst [smem:[#allocation31_spill]] %s2503_s27  ;;  %p3054_p1 = scmp.eq.s32.totalorder %s2503_s27, 0 }
  0x17   : > { %p319_p2 = scmp.eq.s32.totalorder %s2503_s27, 1  ;;  %p332_p3 = scmp.lt.s32.totalorder %s2393_s24, 3 }
  0x18   : > { %s2400_s29 = smov [#allocation17]   ;;  %s3095_s3 = sld [smem:[#allocation37_spill]] }
  0x19   : > { %p2511_p4 = pnand %p1670_p0, %p332_p3  ;;  %s376_s30 = sshll.u32 %s2400_s29, 4  ;;  %s2518_s30 = int_to_ptr.vmem [resolvable:$true] %s376_s30 }
  0x1b   : > { %s3093_s28 = scalar_select %p2511_p4, 1, 0 }
  0x1c   : > { %p1943_p6 = pneg %p2511_p4 }
  0x1e   : > { %p2522_p7 = pnand %p1943_p6, %p3054_p1  ;;  %s2077_s16 = scalar_lea.hbm %s3095_s3, 512 }
  0x1f   : > { %p2078_p8 = scmp.ne.s32.totalorder %s3095_s3, %s2077_s16  ;;  %p2084_p12 = scmp.lt.u32.totalorder %s2077_s16, %s3095_s3 }
  0x20   : > { %s3094_s13 = scalar_select %p2522_p7, 1, 0 }
  0x21   : > { %p2534_p9 = pneg %p2522_p7 }
  0x23   : > { %s3096_s19 = scalar_select %p2534_p9, 1, 0 }
  0x24   : > { %p2080_p10 = pnand %p2534_p9, %p2078_p8 }
  0x26   : > { %p2081_p11 = pneg %p2080_p10 }
  0x28   : > { %p2086_p13 = pnand %p2084_p12, %p2081_p11 }
  0x2a   : > { %2089 = shalt.err (!%p2086_p13)
}
  0x2b   : > { %s2090_s29 = scalar_lea.vmem %s2509_s26, 512  ;;  %p2098_p5 = scmp.lt.s32.totalorder %s2509_s26, %s2509_s26 }
  0x2c   : > { %p2091_p0 = scmp.ne.s32.totalorder %s2509_s26, %s2090_s29  ;;  %p2099_p1 = scmp.lt.s32.totalorder %s2090_s29, %s2090_s29 }
  0x2e   : > { %p2093_p3 = pnand %p2091_p0, %p2534_p9  ;;  %p2100_p8 = por %p2099_p1, %p2098_p5 }
  0x30   : > { %p2094_p6 = pneg %p2093_p3 }
  0x32   : > { %p2101_p10 = pnand %p2100_p8, %p2094_p6 }
  0x34   : > { %2104 = shalt.err (!%p2101_p10)
}
  0x35   : > { %s3057_s14 = smov 128   ;;  %s3059_s15 = smov 8  }
  0x36   : > { %1946 = dma.hbm_to_vmem [thread:$0]  (!%p2522_p7), %s3095_s3, 512, %s2509_s26, [#allocation15], %s3057_s14, %s3057_s14, %s3059_s15  }
  0x37   : > { %s3097_s7 = sld [smem:[#allocation40_spill]] }
  0x3d   : > { %s2105_s25 = scalar_lea.hbm %s3097_s7, 256 }
  0x3e   : > { %p2106_p1 = scmp.ne.s32.totalorder %s3097_s7, %s2105_s25  ;;  %p2112_p12 = scmp.lt.u32.totalorder %s2105_s25, %s3097_s7 }
  0x40   : > { %p2108_p5 = pnand %p2106_p1, %p2534_p9 }
  0x42   : > { %p2109_p11 = pneg %p2108_p5 }
  0x44   : > { %p2114_p13 = pnand %p2112_p12, %p2109_p11 }
  0x46   : > { %2117 = shalt.err (!%p2114_p13)
}
  0x47   : > { %s2118_s26 = scalar_lea.vmem %s2518_s30, 256  ;;  %p2126_p8 = scmp.lt.s32.totalorder %s2518_s30, %s2518_s30 }
  0x48   : > { %p2119_p0 = scmp.ne.s32.totalorder %s2518_s30, %s2118_s26  ;;  %p2127_p10 = scmp.lt.s32.totalorder %s2118_s26, %s2118_s26 }
  0x4a   : > { %p2121_p3 = pnand %p2119_p0, %p2534_p9  ;;  %p2128_p1 = por %p2127_p10, %p2126_p8 }
  0x4c   : > { %p2122_p6 = pneg %p2121_p3 }
  0x4e   : > { %p2129_p5 = pnand %p2128_p1, %p2122_p6 }
  0x50   : > { %2132 = shalt.err (!%p2129_p5)
}
  0x51   : > { %1952 = dma.hbm_to_vmem [thread:$0]  (!%p2522_p7), %s3097_s7, 256, %s2518_s30, [#allocation18], %s3057_s14, %s3057_s14, %s3059_s15  }
  0x52   : > { %s1669_s12 = sadd.s32 4294967294, %s2393_s24   ;;  %s2586_s16 = sadd.s32 1, %s2393_s24  }
  0x53   : > { %3098 = sst [smem:[#allocation32_spill]] %s2586_s16  ;;  %s41_s17 = sadd.s32 1, %s2389_s23 }
  0x54   : > { %s38_s18 = ssub.s32 %s2393_s24, %s2586_s16  ;;  %p48_p11 = scmp.ne.s32.totalorder %s2389_s23, %s2385_s22 }
  0x55   : > { %p39_p12 = scmp.eq.s32.totalorder %s38_s18, 0  ;;  %p49_p13 = scmp.eq.s32.totalorder %s2393_s24, 0 }
  0x56   : > { %p54_p0 = scmp.ne.s32.totalorder %s2385_s22, %s2381_s21  ;;  %p2598_p3 = por %p319_p2, %p48_p11 }
  0x57   : > { %s2603_s25 = scalar_select %p39_p12, %s2389_s23, %s41_s17  }
  0x58   : > { %s3099_s20 = scalar_select %p2598_p3, 1, 0 }
  0x59   : > { %3101 = sst [smem:[#allocation34_spill]] %s2603_s25  ;;  %p50_p6 = por %p49_p13, %p48_p11 }
  0x5a   : > { %3100 = sst [smem:[#allocation33_spill]] %s3099_s20  ;;  %p3102_p8 = scmp.eq.s32.totalorder %s2503_s27, 0 }
  0x5b   : > { %p325_p1 = scmp.eq.s32.totalorder %s1669_s12, 1  ;;  %p1978_p5 = scmp.lt.s32.totalorder %s2393_s24, 2 }
  0x5c   : > { %p2607_p10 = por %p3102_p8, %p54_p0  ;;  %s3061_s29 = sand.u32 1, %s2389_s23  }
  0x5d   : > { %s2614_s26 = sshll.u32 %s2393_s24, 8  ;;  %p2616_p4 = por %p325_p1, %p54_p0 }
  0x5e   : > { %s3103_s30 = scalar_select %p2607_p10, 1, 0 }
  0x5f   : > { %s3104_s6 = scalar_select %p2616_p4, 1, 0 }
  0x60   : > { %s2622_s11 = sshll.u32 %s3061_s29, 4  ;;  %p2624_p2 = pnand %p1978_p5, %p50_p6 }
  0x61   : > { %3105 = sst [smem:[#allocation35_spill]] %s3104_s6  ;;  %s441_s18 = sand.u32 1, %s2393_s24  }
  0x62   : > { %s3106_s17 = scalar_select %p2624_p2, 1, 0 }
  0x63   : > { %s3107_s1 = sld [smem:[#allocation36_spill]]  ;;  %s445_s3 = scalar_lea.vmem [#allocation11], %s2622_s11 }
  0x64   : > { %s452_s7 = sshll.u32 %s445_s3, 4  ;;  %s2403_s29 = smov [#allocation16]   ;;  %s2636_s7 = int_to_ptr.vmem [resolvable:$true] %s452_s7 }
  0x65   : > { %s2638_s25 = sshll.u32 %s2403_s29, 4  ;;  %s2640_s16 = scalar_lea.sflag [#allocation12], %s441_s18  ;;  %s361_s25 = int_to_ptr.vmem [resolvable:$true] %s2638_s25 }
  0x66   : > { %p2646_p12 = pneg %p2624_p2 }
  0x68   : > { %s3108_s14 = scalar_select %p2646_p12, 1, 0 }
  0x69   : > { %s2633_s15 = scalar_lea.hbm %s3107_s1, %s2614_s26  ;;  %s2138_s24 = scalar_lea.hbm %s3107_s1, 512 }
  0x6a   : > { %s2133_s6 = scalar_lea.hbm %s2633_s15, 256  ;;  %p2139_p6 = scmp.lt.u32.totalorder %s2633_s15, %s3107_s1 }
  0x6b   : > { %p2134_p11 = scmp.ne.s32.totalorder %s2633_s15, %s2133_s6  ;;  %p2140_p8 = scmp.lt.u32.totalorder %s2138_s24, %s2133_s6 }
  0x6c   : > { %p2142_p5 = scmp.lt.u32.totalorder %s2133_s6, %s2633_s15 }
  0x6d   : > { %p2136_p13 = pnand %p2646_p12, %p2134_p11  ;;  %p2141_p1 = por %p2140_p8, %p2139_p6 }
  0x6f   : > { %p2137_p0 = pneg %p2136_p13  ;;  %p2143_p4 = por %p2142_p5, %p2141_p1 }
  0x71   : > { %p2144_p3 = pnand %p2143_p4, %p2137_p0 }
  0x73   : > { %2147 = shalt.err (!%p2144_p3)
}
  0x74   : > { %s2148_s18 = scalar_lea.vmem %s2636_s7, 256  ;;  %s2404_s12 = smov [#allocation11]  }
  0x75   : > { %p2149_p11 = scmp.ne.s32.totalorder %s2636_s7, %s2148_s18  ;;  %s2153_s3 = sshll.u32 %s2404_s12, 4  ;;  %s2154_s3 = int_to_ptr.vmem [resolvable:$false] %s2153_s3 }
  0x76   : > { %s2155_s21 = scalar_lea.vmem %s2154_s3, 512  ;;  %p2156_p7 = scmp.lt.s32.totalorder %s2636_s7, %s2154_s3 }
  0x77   : > { %p2151_p13 = pnand %p2149_p11, %p2646_p12  ;;  %p2157_p9 = scmp.lt.s32.totalorder %s2155_s21, %s2148_s18 }
  0x79   : > { %p2152_p10 = pneg %p2151_p13  ;;  %p2158_p6 = por %p2157_p9, %p2156_p7 }
  0x7b   : > { %p2159_p8 = pnand %p2158_p6, %p2152_p10 }
  0x7d   : > { %2162 = shalt.err (!%p2159_p8)
}
  0x7e   : > { %s3109_s24 = smov 8   ;;  %s3110_s6 = smov 128  }
  0x7f   : > { %1965 = dma.hbm_to_vmem [thread:$0]  (!%p2624_p2), %s2633_s15, 256, %s2636_s7, %s2640_s16, %s3110_s6, %s3110_s6, %s3109_s24  }
  0x80   : > { %s2163_s3 = scalar_lea.hbm %s3046_s5, 256  ;;  %p3111_p7 = scmp.ne.s32.totalorder %s3096_s19, 0 }
  0x81   : > { %p2164_p4 = scmp.ne.s32.totalorder %s3046_s5, %s2163_s3  ;;  %p2170_p10 = scmp.lt.u32.totalorder %s2163_s3, %s3046_s5 }
  0x83   : > { %p2166_p9 = pnand %p2164_p4, %p3111_p7 }
  0x85   : > { %p2167_p3 = pneg %p2166_p9 }
  0x87   : > { %p2172_p0 = pnand %p2170_p10, %p2167_p3 }
  0x89   : > { %2175 = shalt.err (!%p2172_p0)
}
  0x8a   : > { %s2176_s4 = scalar_lea.vmem %s361_s25, 256  ;;  %p2184_p13 = scmp.lt.s32.totalorder %s361_s25, %s361_s25 }
  0x8b   : > { %p2177_p1 = scmp.ne.s32.totalorder %s361_s25, %s2176_s4  ;;  %p2185_p6 = scmp.lt.s32.totalorder %s2176_s4, %s2176_s4 }
  0x8d   : > { %p2179_p5 = pnand %p2177_p1, %p3111_p7  ;;  %p2186_p8 = por %p2185_p6, %p2184_p13 }
  0x8f   : > { %p2180_p11 = pneg %p2179_p5 }
  0x91   : > { %p2187_p2 = pnand %p2186_p8, %p2180_p11 }
  0x93   : > { %2190 = shalt.err (!%p2187_p2)
}
  0x94   : > { %p3112_p4 = scmp.ne.s32.totalorder %s3094_s13, 0  ;;  %s2405_s15 = smov [#allocation19]  }
  0x95   : > { %s390_s20 = sshll.u32 %s2405_s15, 4  ;;  %s2406_s29 = smov [#allocation20]   ;;  %s391_s20 = int_to_ptr.vmem [resolvable:$true] %s390_s20 }
  0x96   : > { %1949 = dma.hbm_to_vmem [thread:$0]  (!%p3112_p4), %s3046_s5, 256, %s361_s25, [#allocation15], %s3110_s6, %s3110_s6, %s3109_s24  }
  0x97   : > { %s403_s12 = sshll.u32 %s2406_s29, 4  ;;  %s2191_s18 = scalar_lea.hbm %s3049_s8, 16  ;;  %s404_s12 = int_to_ptr.vmem [resolvable:$true] %s403_s12 }
  0x98   : > { %p2192_p2 = scmp.ne.s32.totalorder %s3049_s8, %s2191_s18  ;;  %p2198_p10 = scmp.lt.u32.totalorder %s2191_s18, %s3049_s8 }
  0x9a   : > { %p2194_p9 = pnand %p2192_p2, %p3111_p7 }
  0x9c   : > { %p2195_p3 = pneg %p2194_p9 }
  0x9e   : > { %p2200_p0 = pnand %p2198_p10, %p2195_p3 }
  0xa0   : > { %2203 = shalt.err (!%p2200_p0)
}
  0xa1   : > { %s2204_s25 = scalar_lea.vmem %s391_s20, 16  ;;  %s2211_s7 = scalar_lea.vmem %s391_s20, 32 }
  0xa2   : > { %p2205_p1 = scmp.ne.s32.totalorder %s391_s20, %s2204_s25  ;;  %p2212_p13 = scmp.lt.s32.totalorder %s391_s20, %s391_s20 }
  0xa3   : > { %p2213_p6 = scmp.lt.s32.totalorder %s2211_s7, %s2204_s25 }
  0xa4   : > { %p2207_p5 = pnand %p2205_p1, %p3111_p7 }
  0xa5   : > { %p2214_p8 = por %p2213_p6, %p2212_p13 }
  0xa6   : > { %p2208_p11 = pneg %p2207_p5 }
  0xa8   : > { %p2215_p12 = pnand %p2214_p8, %p2208_p11 }
  0xaa   : > { %2218 = shalt.err (!%p2215_p12)
}
  0xab   : > { %1955 = dma.hbm_to_vmem [thread:$0]  (!%p3112_p4), %s3049_s8, 16, %s391_s20, [#allocation18]  }
  0xac   : > { %s2219_s3 = scalar_lea.hbm %s3051_s10, 512 }
  0xad   : > { %p2220_p2 = scmp.ne.s32.totalorder %s3051_s10, %s2219_s3  ;;  %p2226_p12 = scmp.lt.u32.totalorder %s2219_s3, %s3051_s10 }
  0xaf   : > { %p2222_p9 = pnand %p2220_p2, %p3111_p7 }
  0xb1   : > { %p2223_p3 = pneg %p2222_p9 }
  0xb3   : > { %p2228_p10 = pnand %p2226_p12, %p2223_p3 }
  0xb5   : > { %2231 = shalt.err (!%p2228_p10)
}
  0xb6   : > { %s2232_s25 = scalar_lea.vmem %s404_s12, 512  ;;  %p2240_p11 = scmp.lt.s32.totalorder %s404_s12, %s404_s12 }
  0xb7   : > { %p2233_p0 = scmp.ne.s32.totalorder %s404_s12, %s2232_s25  ;;  %p2241_p13 = scmp.lt.s32.totalorder %s2232_s25, %s2232_s25 }
  0xb9   : > { %p2235_p1 = pnand %p2233_p0, %p3111_p7  ;;  %p2242_p6 = por %p2241_p13, %p2240_p11 }
  0xbb   : > { %p2236_p5 = pneg %p2235_p1 }
  0xbd   : > { %p2243_p8 = pnand %p2242_p6, %p2236_p5 }
  0xbf   : > { %2246 = shalt.err (!%p2243_p8)
}
  0xc0   : > { %1958 = dma.hbm_to_vmem [thread:$0]  (!%p3112_p4), %s3051_s10, 512, %s404_s12, [#allocation21], %s3110_s6, %s3110_s6, %s3109_s24  }
  0xc1   : > { %s2738_s15 = scalar_lea.hbm %s3041_s0, %s2614_s26  ;;  %s424_s13 = scalar_lea.vmem [#allocation8], %s2622_s11 }
  0xc2   : > { %s431_s27 = sshll.u32 %s424_s13, 4  ;;  %s2747_s4 = scalar_lea.hbm %s3043_s2, %s2614_s26  ;;  %s2741_s27 = int_to_ptr.vmem [resolvable:$true] %s431_s27 }
  0xc3   : > { %s3113_s18 = sand.u32 1, %s2389_s23   ;;  %s2247_s21 = scalar_lea.hbm %s2738_s15, 256 }
  0xc4   : > { %s2751_s12 = scalar_lea.sflag [#allocation9], %s3113_s18  ;;  %p2248_p7 = scmp.ne.s32.totalorder %s2738_s15, %s2247_s21 }
  0xc5   : > { %p3114_p4 = scmp.ne.s32.totalorder %s3108_s14, 0  ;;  %s2252_s20 = scalar_lea.hbm %s3041_s0, 512 }
  0xc6   : > { %p2253_p3 = scmp.lt.u32.totalorder %s2738_s15, %s3041_s0  ;;  %p2254_p12 = scmp.lt.u32.totalorder %s2252_s20, %s2247_s21 }
  0xc7   : > { %p2250_p2 = pnand %p2248_p7, %p3114_p4  ;;  %p2256_p0 = scmp.lt.u32.totalorder %s2247_s21, %s2738_s15 }
  0xc8   : > { %p2255_p10 = por %p2254_p12, %p2253_p3 }
  0xc9   : > { %p2251_p9 = pneg %p2250_p2 }
  0xca   : > { %p2257_p1 = por %p2256_p0, %p2255_p10 }
  0xcc   : > { %p2258_p5 = pnand %p2257_p1, %p2251_p9 }
  0xce   : > { %2261 = shalt.err (!%p2258_p5)
}
  0xcf   : > { %s2262_s26 = scalar_lea.vmem %s2741_s27, 256  ;;  %s2407_s9 = smov [#allocation8]  }
  0xd0   : > { %p2263_p11 = scmp.ne.s32.totalorder %s2741_s27, %s2262_s26  ;;  %s2267_s13 = sshll.u32 %s2407_s9, 4  ;;  %s2268_s13 = int_to_ptr.vmem [resolvable:$false] %s2267_s13 }
  0xd1   : > { %s2269_s29 = scalar_lea.vmem %s2268_s13, 512  ;;  %p2270_p8 = scmp.lt.s32.totalorder %s2741_s27, %s2268_s13 }
  0xd2   : > { %p2265_p13 = pnand %p2263_p11, %p3114_p4  ;;  %p2271_p7 = scmp.lt.s32.totalorder %s2269_s29, %s2262_s26 }
  0xd4   : > { %p2266_p6 = pneg %p2265_p13  ;;  %p2272_p2 = por %p2271_p7, %p2270_p8 }
  0xd6   : > { %p2273_p3 = pnand %p2272_p2, %p2266_p6 }
  0xd8   : > { %2276 = shalt.err (!%p2273_p3)
}
  0xd9   : > { %p3115_p9 = scmp.ne.s32.totalorder %s3106_s17, 0  ;;  %s466_s3 = scalar_lea.vmem [#allocation13], %s2622_s11 }
  0xda   : > { %s473_s18 = sshll.u32 %s466_s3, 4  ;;  %s2277_s21 = scalar_lea.hbm %s2747_s4, 256  ;;  %s2779_s18 = int_to_ptr.vmem [resolvable:$true] %s473_s18 }
  0xdb   : > { %1962 = dma.hbm_to_vmem [thread:$0]  (!%p3115_p9), %s2738_s15, 256, %s2741_s27, %s2751_s12, %s3110_s6, %s3110_s6, %s3109_s24  }
  0xdc   : > { %p2278_p12 = scmp.ne.s32.totalorder %s2747_s4, %s2277_s21  ;;  %s2282_s20 = scalar_lea.hbm %s3043_s2, 512 }
  0xdd   : > { %p2283_p1 = scmp.lt.u32.totalorder %s2747_s4, %s3043_s2  ;;  %p2284_p5 = scmp.lt.u32.totalorder %s2282_s20, %s2277_s21 }
  0xde   : > { %p2280_p10 = pnand %p2278_p12, %p3114_p4  ;;  %p2286_p13 = scmp.lt.u32.totalorder %s2277_s21, %s2747_s4 }
  0xdf   : > { %p2285_p11 = por %p2284_p5, %p2283_p1 }
  0xe0   : > { %p2281_p0 = pneg %p2280_p10 }
  0xe1   : > { %p2287_p6 = por %p2286_p13, %p2285_p11 }
  0xe3   : > { %p2288_p8 = pnand %p2287_p6, %p2281_p0 }
  0xe5   : > { %2291 = shalt.err (!%p2288_p8)
}
  0xe6   : > { %s2292_s11 = scalar_lea.vmem %s2779_s18, 256  ;;  %s2408_s15 = smov [#allocation13]  }
  0xe7   : > { %p2293_p7 = scmp.ne.s32.totalorder %s2779_s18, %s2292_s11  ;;  %s2297_s27 = sshll.u32 %s2408_s15, 4  ;;  %s2298_s27 = int_to_ptr.vmem [resolvable:$false] %s2297_s27 }
  0xe8   : > { %s2299_s12 = scalar_lea.vmem %s2298_s27, 512  ;;  %p2300_p12 = scmp.lt.s32.totalorder %s2779_s18, %s2298_s27 }
  0xe9   : > { %p2295_p2 = pnand %p2293_p7, %p3114_p4  ;;  %p2301_p10 = scmp.lt.s32.totalorder %s2299_s12, %s2292_s11 }
  0xeb   : > { %p2296_p3 = pneg %p2295_p2  ;;  %p2302_p1 = por %p2301_p10, %p2300_p12 }
  0xed   : > { %p2303_p5 = pnand %p2302_p1, %p2296_p3 }
  0xef   : > { %2306 = shalt.err (!%p2303_p5)
}
  0xf0   : > { %1968 = dma.hbm_to_vmem [thread:$0]  (!%p3115_p9), %s2747_s4, 256, %s2779_s18, %s2640_s16, %s3110_s6, %s3110_s6, %s3109_s24  }
  0xf1   : > { %p3116_p4 = scmp.ne.s32.totalorder %s3093_s28, 0 }
  0xf2   : > { %s2809_s14 = sand.u32 (!%p3116_p4), 1, %s2385_s22   ;;  %p3117_p0 = scmp.ne.s32.totalorder (!%p3116_p4), %s3103_s30, 0 }
  0xf3   : > { %485 = sbr.rel (%p3116_p4) target bundleno = 1656 (0x678), region = 68  ;;  %s2812_s26 = sshll.u32 (!%p3116_p4), %s2809_s14, 4 }
  0xf4   : > { %s488_s17 = scalar_lea.sflag (!%p3116_p4), [#allocation9], %s2809_s14  ;;  %s491_s9 = scalar_lea.vmem (!%p3116_p4), [#allocation8], %s2812_s26 }
  0xfa   : > { %2356 = dma.done.wait (%p3117_p0), %s488_s17, 256  }
  0xfb   : > { %2358 = vsyncadd (%p3117_p0), %s488_s17, 4294967040  ;;  %s3118_s16 = sld [smem:[#allocation31_spill]]  ;;  %s500_s6 = scalar_lea.vmem [#allocation11], %s2812_s26 }
 0x101   : > { %s496_s28 = sand.u32 1, %s3118_s16  }
 0x102   : > { %s497_s24 = scalar_lea.sflag [#allocation12], %s496_s28 }
 0x103   : > { %2360 = dma.done.wait (%p3117_p0), %s497_s24, 512  }
 0x104   : > { %2362 = vsyncadd (%p3117_p0), %s497_s24, 4294966784  ;;  %s509_s4 = scalar_lea.vmem [#allocation13], %s2812_s26  ;;  %p3119_p9 = scmp.eq.s32.totalorder %s3118_s16, 0 }
 0x106   : > { %2364 = dma.done.wait (%p3119_p9), [#allocation15], 768   ;;  %p3120_p11 = pmov %p3119_p9 }
 0x107   : > { %p3121_p13 = pmov %p3119_p9 }
 0x108   : > { %2366 = vsyncadd (%p3120_p11), [#allocation15], 4294966528 }
 0x109   : > { %2368 = dma.done.wait (%p3121_p13), [#allocation18], 272   ;;  %p3122_p6 = pmov %p3119_p9 }
 0x10b   : > { %2370 = vsyncadd (%p3122_p6), [#allocation18], 4294967024  ;;  %p3123_p8 = pmov %p3122_p6 }
 0x10c   : > { %p3124_p7 = pmov %p3122_p6 }
 0x10d   : > { %2372 = dma.done.wait (%p3123_p8), [#allocation21], 512  }
 0x10e   : > { %2374 = vsyncadd (%p3124_p7), [#allocation21], 4294966784  ;;  %v2839_v0 = vld [vmem:[#allocation20] sm:$0xff]  ;;  %v2841_v1 = vld [vmem:[#allocation20 + $0x8] sm:$0xff]  ;;  %s3125_s29 = sld [smem:[#allocation41_spill]]  ;;  %vm597_vm0 = vcmask 261120  }
 0x10f   : > { %v2843_v2 = vld [vmem:[#allocation20 + $0x10] sm:$0xff]  ;;  %v2845_v3 = vld [vmem:[#allocation20 + $0x18] sm:$0xff]  ;;  %v587_v5 = vld [vmem:[#allocation14 + $0x8] sm:$0xff]  ;;  %vm780_vm1 = vcmask 130048   ;;  %s3126_s11 = sld [smem:[#allocation38_spill]]  ;;  %s3127_s12 = sld [smem:[#allocation42_spill]] }
 0x110   : > { %v586_v4 = vld [vmem:[#allocation14] sm:$0xff]  ;;  %v588_v9 = vld [vmem:[#allocation14 + $0x10] sm:$0xff]  ;;  %v589_v11 = vld [vmem:[#allocation14 + $0x18] sm:$0xff]  ;;  %s3128_s16 = sld [smem:[#allocation39_spill]]  ;;  %s2409_s28 = smov 96  }
 0x111   : > { %v1857_v6 = vpack.c.bf16 %v587_v5, %v586_v4  ;;  %v1861_v14 = vpack.c.bf16 %v589_v11, %v588_v9  ;;  %v584_v16 = vld [vmem:[%s491_s9] sm:$0xff]  ;;  %v772_v18 = vld [vmem:[#allocation16 + $0x8] sm:$0xff]  ;;  %v877_v20 = vld [vmem:[#allocation17 + $0x8] sm:$0xff]  ;;  %s579_s24 = scalar_lea.vmem [#allocation22], %s2812_s26 }
 0x112   : > { %v771_v17 = vld [vmem:[#allocation16] sm:$0xff]  ;;  %v876_v19 = vld [vmem:[#allocation17] sm:$0xff]  ;;  %1780 = vmatprep.mubr.msk.f32.mxu0 %vm597_vm0, %v584_v16  ;;  %1791 = vmatprep.mubr.msk.f32.mxu1 %vm597_vm0, %v584_v16  ;;  %v585_v23 = vld [vmem:[%s491_s9 + $0x8] sm:$0xff] }
 0x113   : > { %1858 = vmatprep.subr.bf16.mxu0 %v1857_v6  ;;  %v1873_v21 = vpack.c.bf16 %v772_v18, %v771_v17  ;;  %v1877_v22 = vpack.c.bf16 %v877_v20, %v876_v19  ;;  %v769_v24 = vld [vmem:[%s500_s6] sm:$0xff]  ;;  %v770_v26 = vld [vmem:[%s500_s6 + $0x8] sm:$0xff]  ;;  %s2897_s6 = smov 0  }
 0x114   : > { %v681_v7 = vld [vmem:[%s3125_s29] sm:$0xff]  ;;  %v682_v8 = vld [vmem:[%s3125_s29 + $0x8] sm:$0xff]  ;;  %v683_v12 = vld [vmem:[%s3125_s29 + $0x10] sm:$0xff]  ;;  %1860 = vmatpush3.bf16.msra.mxu0 %v1857_v6 }
 0x115   : > { %v1865_v10 = vpack.c.bf16 %v682_v8, %v681_v7  ;;  %v684_v13 = vld [vmem:[%s3125_s29 + $0x18] sm:$0xff]  ;;  %1862 = vmatprep.subr.bf16.mxu0 %v1861_v14  ;;  %v874_v25 = vld [vmem:[%s509_s4] sm:$0xff] }
 0x116   : > { %v1869_v15 = vpack.c.bf16 %v684_v13, %v683_v12  ;;  %v875_v27 = vld [vmem:[%s509_s4 + $0x8] sm:$0xff]  ;;  %v1696_v28 = vld [vmem:[%s3126_s11] ss:$0 sm:$0xff] }
 0x117   : > { %1866 = vmatprep.subr.bf16.mxu1 %v1865_v10  ;;  %v1699_v29 = vld [vmem:[%s3127_s12] ss:$0 sm:$0xff] }
 0x118   : > { %1868 = vmatpush3.bf16.msra.mxu1 %v1865_v10  ;;  %1864 = vmatpush3.bf16.msra.mxu0 %v1861_v14  ;;  %v1702_v37 = vld [vmem:[%s3128_s16] ss:$0 sm:$0xff] }
 0x119   : > { %1870 = vmatprep.subr.bf16.mxu1 %v1869_v15  ;;  %1874 = vmatprep.subr.bf16.mxu0 %v1873_v21  ;;  %v1705_v39 = vld [vmem:[#allocation19] ss:$0 sm:$0xff] }
 0x11b   : > { %1781 = vmatmul.mubr.msk.f32.vlgmr.msra.gmra.mrb[0].mxu0 %vm597_vm0, %v585_v23 }
 0x11c   : > { %1872 = vmatpush3.bf16.msra.mxu1 %v1869_v15  ;;  %1876 = vmatpush3.bf16.msra.mxu0 %v1873_v21 }
 0x11d   : > { %1878 = vmatprep.subr.bf16.mxu1 %v1877_v22  ;;  %1798 = vmatprep.mubr.msk.f32.mxu0 %vm780_vm1, %v769_v24 }
 0x11f   : > { %1792 = vmatmul.mubr.msk.f32.vlgmr.msra.gmra.mrb[0].mxu1 %vm597_vm0, %v585_v23  ;;  %1799 = vmatmul.mubr.msk.f32.vlgmr.msra.gmra.mrb[2].mxu0 %vm780_vm1, %v770_v26 }
 0x120   : > { %1880 = vmatpush3.bf16.msra.mxu1 %v1877_v22  ;;  %1805 = vmatprep.mubr.msk.f32.mxu1 %vm780_vm1, %v874_v25 }
 0x123   : > { %1806 = vmatmul.mubr.msk.f32.vlgmr.msra.gmra.mrb[2].mxu1 %vm780_vm1, %v875_v27 }
 0x1ee   : > { %v1782_v30 = vpop.f32.mrb[0].mxu0 }
 0x1ef   : > { %v676_v31 = vadd.f32 %v1782_v30, %v1696_v28  ;;  %v670_v33 = vpop.f32.mrb[1].mxu0 }
 0x1f0   : > { %v671_v35 = vadd.f32 %v1696_v28, %v670_v33 }
 0x1f1   : > { %680 = vst.msk [vmem:[#allocation2 + $0x8] sm:$0xff] %vm597_vm0, %v676_v31 }
 0x1f2   : > { %v1793_v32 = vpop.f32.mrb[0].mxu1  ;;  %679 = vst.msk [vmem:[#allocation2] sm:$0xff] %vm597_vm0, %v671_v35  ;;  %v1800_v40 = vpop.f32.mrb[2].mxu0 }
 0x1f3   : > { %v764_v34 = vadd.f32 %v1793_v32, %v1699_v29  ;;  %v758_v36 = vpop.f32.mrb[1].mxu1  ;;  %v859_v41 = vadd.f32 %v1800_v40, %v1702_v37  ;;  %v853_v43 = vpop.f32.mrb[3].mxu0 }
 0x1f4   : > { %v759_v38 = vadd.f32 %v1699_v29, %v758_v36  ;;  %v854_v45 = vadd.f32 %v1702_v37, %v853_v43 }
 0x1f5   : > { %768 = vst.msk [vmem:[#allocation3 + $0x8] sm:$0xff] %vm597_vm0, %v764_v34  ;;  %863 = vst.msk [vmem:[#allocation4 + $0x8] sm:$0xff] %vm597_vm0, %v859_v41 }
 0x1f6   : > { %767 = vst.msk [vmem:[#allocation3] sm:$0xff] %vm597_vm0, %v759_v38  ;;  %v1807_v42 = vpop.f32.mrb[2].mxu1  ;;  %862 = vst.msk [vmem:[#allocation4] sm:$0xff] %vm597_vm0, %v854_v45  ;;  %866 = vrot.lane.b32.xlu0 %v854_v45, %s2409_s28 }
 0x1f7   : > { %v963_v44 = vadd.f32 %v1807_v42, %v1705_v39  ;;  %v957_v46 = vpop.f32.mrb[3].mxu1 }
 0x1f8   : > { %v958_v47 = vadd.f32 %v1705_v39, %v957_v46 }
 0x1f9   : > { %967 = vst.msk [vmem:[#allocation6 + $0x8] sm:$0xff] %vm597_vm0, %v963_v44 }
 0x1fa   : > { %966 = vst.msk [vmem:[#allocation6] sm:$0xff] %vm597_vm0, %v958_v47  ;;  %970 = vrot.lane.b32.xlu1 %v958_v47, %s2409_s28  ;;  %868 = vrot.lane.b32.xlu0 %v859_v41, %s2409_s28 }
 0x1fe   : > { %972 = vrot.lane.b32.xlu1 %v963_v44, %s2409_s28 }
 0x268   : > { %v867_v48 = vpop.permute.xlu0 %866 }
 0x269   : > { %872 = vst.msk [vmem:[#allocation5] sm:$0xff] %vm597_vm0, %v867_v48 }
 0x26c   : > { %v971_v49 = vpop.permute.xlu1 %970  ;;  %v869_v50 = vpop.permute.xlu0 %868 }
 0x26d   : > { %976 = vst.msk [vmem:[#allocation7] sm:$0xff] %vm597_vm0, %v971_v49  ;;  %873 = vst.msk [vmem:[#allocation5 + $0x8] sm:$0xff] %vm597_vm0, %v869_v50 }
 0x270   : > { %v973_v51 = vpop.permute.xlu1 %972 }
 0x271   : > { %977 = vst.msk [vmem:[#allocation7 + $0x8] sm:$0xff] %vm597_vm0, %v973_v51 }
 0x272 LB: >> { %v996_v52 = vlaneseq  ;;  %v2410_v53 = vmov 0.0|0.0   ;;  %v2411_v54 = vmov 1966171168   ;;  %s2905_s4 = sshll.u32 %s2397_s6, 3  ;;  %vm2412_vm2 = vmmov 0   ;;  %vm2931_vm3 = vmpackc.low %vm597_vm0, %vm597_vm0  ;;  %s987_s6 = sadd.s32 1, %s2397_s6   ;;  %s2397_s6 = sphi %s2897_s6, %s987_s6  }
 0x273   : >> { %1881 = vmatprep.subr.bf16.mxu0 %v2410_v53  ;;  %v994_v55 = vunpack.c.l.s4 %v2411_v54  ;;  %1897 = vmatprep.subr.bf16.mxu1 %v2410_v53  ;;  %v2413_v57 = vmov 0.0   ;;  %s989_s30 = scalar_lea.vmem [#allocation6], %s2905_s4  ;;  %s1041_s13 = scalar_lea.vmem [#allocation4], %s2905_s4  ;;  %vm1198_vm4 = vcmask 523264  }
 0x274   : >> { %v997_v56 = vshrl.u32 %v996_v52, 7  ;;  %1824 = vmatprep.mubr.msk.f32.mxu0 %vm2412_vm2, %v2413_v57  ;;  %1843 = vmatprep.mubr.msk.f32.mxu1 %vm2412_vm2, %v2413_v57  ;;  %v990_v59 = vld [vmem:[%s989_s30] sm:$0xff]  ;;  %s1099_s3 = scalar_lea.vmem [#allocation2], %s2905_s4  ;;  %s1210_s18 = scalar_lea.vmem [#allocation7], %s2905_s4 }
 0x275   : >> { %v995_v58 = vunpack.c.0.s8 %v994_v55  ;;  %v992_v60 = vcombine.high %v990_v59, %v990_v59  ;;  %v1042_v7 = vld [vmem:[%s1041_s13] sm:$0xff]  ;;  %s1262_s21 = scalar_lea.vmem [#allocation5], %s2905_s4  ;;  %s1393_s1 = scalar_lea.vmem [#allocation3], %s2905_s4 }
 0x276   : >> { %v2915_v63 = vsub.s32 0, %v997_v56  ;;  %v1100_v45 = vld [vmem:[%s1099_s3] sm:$0xff]  ;;  %s1470_s25 = scalar_lea.vmem %s579_s24, %s2905_s4 [#allocation22]  ;;  %p984_p2 = scmp.ge.s32.totalorder %s987_s6, 2  }
 0x277   : >> { %v2912_v61 = vsub.s32 %v995_v58, %v997_v56  ;;  %v1263_v54 = vld [vmem:[%s1262_s21] sm:$0xff]  ;;  %s3131_s20 = sld [smem:[#allocation31_spill]] (%p984_p2)  ;;  %s3132_s7 = sld [smem:[#allocation33_spill]] (%p984_p2) }
 0x278   : >> { %v1211_v49 = vld [vmem:[%s1210_s18] sm:$0xff]  ;;  %s3133_s27 = sld [smem:[#allocation43_spill]] (%p984_p2)  ;;  %s1486_s17 = sshll.u32 (%p984_p2), %s579_s24, 4  ;;  %s2997_s17 = int_to_ptr.vmem [resolvable:$true] %s1486_s17 }
 0x279   : >> { %v999_v62 = vrot.slane %v990_v59, %v2912_v61  ;;  %v1006_v4 = vrot.slane %v992_v60, %v2912_v61  ;;  %v1220_v50 = vrot.slane %v1211_v49, %v2912_v61  ;;  %s1473_s9 = scalar_lea.sflag (%p984_p2), [#allocation10], %s2809_s14  ;;  %s2307_s16 = scalar_lea.vmem (%p984_p2), %s2997_s17, 256 }
 0x27a   : > { %p2308_p3 = scmp.ne.s32.totalorder (%p984_p2), %s2997_s17, %s2307_s16  ;;  %s2414_s28 = smov (%p984_p2), [#allocation22]  }
 0x27b   : >> { %v1007_v5 = vcombine.high %v999_v62, %v999_v62  ;;  %v1015_v6 = vrot.slane %v999_v62, %v2912_v61  ;;  %v1008_v11 = vcombine.high %v1006_v4, %v1006_v4  ;;  %v1022_v19 = vrot.slane %v1006_v4, %v2912_v61  ;;  %s2311_s6 = sshll.u32 (%p984_p2), %s2414_s28, 4  ;;  %s2312_s6 = int_to_ptr.vmem [resolvable:$false] %s2311_s6 }
 0x27c   : >> { %v1228_v51 = vcombine.high %v1220_v50, %v1220_v50  ;;  %v1236_v52 = vrot.slane %v1220_v50, %v2912_v61  ;;  %s2313_s4 = scalar_lea.vmem (%p984_p2), %s2312_s6, 512  ;;  %p2314_p5 = scmp.lt.s32.totalorder (%p984_p2), %s2997_s17, %s2312_s6 }
 0x27d   : >> { %v1029_v8 = vrot.slane %v1007_v5, %v2912_v61  ;;  %v1037_v9 = vcombine.high %v1015_v6, %v1015_v6  ;;  %v1046_v10 = vrot.slane %v1015_v6, %v2915_v63  ;;  %v1036_v21 = vrot.slane %v1008_v11, %v2912_v61  ;;  %s1728_s19 = sshll.u32 (%p984_p2), %s3131_s20, 8  ;;  %p3134_p12 = scmp.ne.s32.totalorder (%p984_p2), %s3132_s7, 0 }
 0x27e   : >> { %v1062_v22 = vrot.slane %v1022_v19, %v2915_v63  ;;  %v1038_v25 = vcombine.high %v1022_v19, %v1022_v19  ;;  %v1250_v55 = vrot.slane %v1228_v51, %v2912_v61  ;;  %v1267_v56 = vrot.slane %v1236_v52, %v2915_v63  ;;  %s2993_s12 = scalar_lea.hbm (%p984_p2), %s3133_s27, %s1728_s19  ;;  %p2315_p4 = scmp.lt.s32.totalorder (%p984_p2), %s2313_s4, %s2307_s16 }
 0x27f   : >> { %v1039_v12 = vcombine.high %v1029_v8, %v1029_v8  ;;  %v1050_v13 = vrot.slane %v1029_v8, %v2915_v63  ;;  %v1083_v14 = vadd.f32 %v1046_v10, %v1042_v7  ;;  %v1054_v15 = vrot.slane %v1037_v9, %v2915_v63  ;;  %p2309_p10 = pnand (%p984_p2), %p2308_p3, %p3134_p12 }
 0x280   : >> { %v1066_v23 = vrot.slane %v1036_v21, %v2915_v63  ;;  %v1087_v24 = vadd.f32 %v1062_v22, %v1042_v7  ;;  %v1040_v28 = vcombine.high %v1036_v21, %v1036_v21  ;;  %v1070_v32 = vrot.slane %v1038_v25, %v2915_v63  ;;  %p2316_p0 = por (%p984_p2), %p2315_p4, %p2314_p5 }
 0x281   : >> { %v1084_v16 = vadd.f32 %v1050_v13, %v1042_v7  ;;  %2041 = vtanh.f32 %v1083_v14  ;;  %v1058_v17 = vrot.slane %v1039_v12, %v2915_v63  ;;  %v1085_v18 = vadd.f32 %v1054_v15, %v1042_v7  ;;  %p2310_p1 = pneg (%p984_p2), %p2309_p10 }
 0x282   : >> { %v1088_v27 = vadd.f32 %v1066_v23, %v1042_v7  ;;  %v1074_v33 = vrot.slane %v1040_v28, %v2915_v63  ;;  %v1089_v36 = vadd.f32 %v1070_v32, %v1042_v7  ;;  %v1271_v58 = vrot.slane %v1250_v55, %v2915_v63 }
 0x283   : >> { %2043 = vtanh.f32 %v1084_v16  ;;  %v1086_v20 = vadd.f32 %v1058_v17, %v1042_v7  ;;  %v1304_v59 = vadd.f32 %v1267_v56, %v1263_v54  ;;  %v1213_v9 = vcombine.high %v1211_v49, %v1211_v49  ;;  %p2317_p9 = pnand (%p984_p2), %p2316_p0, %p2310_p1 }
 0x284   : >> { %2045 = vtanh.f32 %v1085_v18  ;;  %v1090_v37 = vadd.f32 %v1074_v33, %v1042_v7  ;;  %v1305_v60 = vadd.f32 %v1271_v58, %v1263_v54  ;;  %v1258_v10 = vcombine.high %v1236_v52, %v1236_v52 }
 0x285   : >> { %2047 = vtanh.f32 %v1086_v20  ;;  %v1260_v11 = vcombine.high %v1250_v55, %v1250_v55  ;;  %v1227_v12 = vrot.slane %v1213_v9, %v2912_v61 }
 0x286   : >> { %2049 = vtanh.f32 %v1087_v24  ;;  %v1275_v15 = vrot.slane %v1258_v10, %v2915_v63 }
 0x287   : >> { %2051 = vtanh.f32 %v1088_v27  ;;  %v1279_v16 = vrot.slane %v1260_v11, %v2915_v63  ;;  %v1229_v17 = vcombine.high %v1227_v12, %v1227_v12  ;;  %v1243_v20 = vrot.slane %v1227_v12, %v2912_v61 }
 0x288   : >> { %2053 = vtanh.f32 %v1089_v36  ;;  %v1306_v18 = vadd.f32 %v1275_v15, %v1263_v54 }
 0x289   : >> { %2055 = vtanh.f32 %v1090_v37  ;;  %v1307_v19 = vadd.f32 %v1279_v16, %v1263_v54  ;;  %v1257_v21 = vrot.slane %v1229_v17, %v2912_v61  ;;  %v1283_v22 = vrot.slane %v1243_v20, %v2915_v63 }
 0x28a   : >> { %2057 = vtanh.f32 %v1304_v59 }
 0x28b   : >> { %v2042_v26 = vpop.eup %2041  ;;  %2059 = vtanh.f32 %v1305_v60  ;;  %v1287_v23 = vrot.slane %v1257_v21, %v2915_v63  ;;  %v1308_v24 = vadd.f32 %v1283_v22, %v1263_v54  ;;  %v1261_v27 = vcombine.high %v1257_v21, %v1257_v21 }
 0x28d   : >> { %v2044_v29 = vpop.eup %2043  ;;  %v1309_v25 = vadd.f32 %v1287_v23, %v1263_v54 }
 0x28e   : >> { %v1882_v31 = vpack.c.bf16 %v2044_v29, %v2042_v26  ;;  %v2046_v34 = vpop.eup %2045  ;;  %v1259_v26 = vcombine.high %v1243_v20, %v1243_v20  ;;  %v1295_v29 = vrot.slane %v1261_v27, %v2915_v63 }
 0x28f   : >> { %v2048_v35 = vpop.eup %2047 }
 0x290   : >> { %1884 = vmatpush3.bf16.xpose.msk.msra.mxu0 %vm2931_vm3, %v1882_v31  ;;  %v1886_v38 = vpack.c.bf16 %v2048_v35, %v2046_v34  ;;  %v2050_v39 = vpop.eup %2049  ;;  %v1291_v28 = vrot.slane %v1259_v26, %v2915_v63  ;;  %v1311_v31 = vadd.f32 %v1295_v29, %v1263_v54 }
 0x291   : >> { %1885 = vmatprep.subr.bf16.mxu0 %v2410_v53  ;;  %v2052_v40 = vpop.eup %2051 }
 0x292   : >> { %v1890_v41 = vpack.c.bf16 %v2052_v40, %v2050_v39  ;;  %v2054_v42 = vpop.eup %2053  ;;  %v1310_v30 = vadd.f32 %v1291_v28, %v1263_v54 }
 0x293   : >> { %v2056_v43 = vpop.eup %2055 }
 0x294   : >> { %v1894_v44 = vpack.c.bf16 %v2056_v43, %v2054_v42  ;;  %v2058_v62 = vpop.eup %2057  ;;  %v1913_v43 = vpack.c.bf16 %v2845_v3, %v2843_v2 }
 0x295   : >> { %v2060_v4 = vpop.eup %2059 }
 0x296   : >> { %v1898_v5 = vpack.c.bf16 %v2060_v4, %v2058_v62 }
 0x298   : >> { %1888 = vmatpush3.bf16.xpose.msk.msra.mxu0 %vm2931_vm3, %v1886_v38  ;;  %1899 = vmatpush3.bf16.msra.mxu1 %v1898_v5 }
 0x299   : >> { %1889 = vmatprep.subr.bf16.mxu0 %v2410_v53  ;;  %1900 = vmatprep.subr.bf16.mxu1 %v2410_v53 }
 0x2a0   : >> { %1892 = vmatpush3.bf16.xpose.msk.msra.mxu0 %vm2931_vm3, %v1890_v41  ;;  %v1910_v41 = vpack.c.bf16 %v2841_v1, %v2839_v0 }
 0x2a1   : >> { %1893 = vmatprep.subr.bf16.mxu0 %v2410_v53 }
 0x2a8   : >> { %1896 = vmatpush3.bf16.xpose.msk.msra.mxu0 %vm2931_vm3, %v1894_v44 }
 0x2af   : >> { %1825 = vmatmul.mubr.msk.f32.vlgmr.msra.gmra.mrb[0].mxu0 %vm597_vm0, %v1100_v45 }
 0x382   : >> { %v1194_v46 = vpop.f32.mrb[0].mxu0 }
 0x383   : >> { %v1826_v47 = vpop.f32.mrb[1].mxu0  ;;  %v1199_v48 = vsel %vm1198_vm4, %v1194_v46, -inf }
 0x384   : >> { %1200 = vmax.xlane.f32.xlu0 %v1199_v48 }
 0x411   : >> { %v1201_v6 = vpop.xlane.xlu0 %1200 }
 0x412   : >> { %v1202_v7 = vsub.f32 %v1194_v46, %v1201_v6  ;;  %v1394_v46 = vld [vmem:[%s1393_s1] sm:$0xff] }
 0x414   : >> { %v1203_v8 = vmul.f32 1.442695, %v1202_v7 }
 0x416   : >> { %2061 = vpow2.f32 %v1203_v8 }
 0x417   : >> { %2063 = vtanh.f32 %v1306_v18 }
 0x418   : >> { %2065 = vtanh.f32 %v1307_v19 }
 0x419   : >> { %2067 = vtanh.f32 %v1308_v24 }
 0x41a   : >> { %2069 = vtanh.f32 %v1309_v25 }
 0x41b   : >> { %2071 = vtanh.f32 %v1310_v30 }
 0x41c   : >> { %2073 = vtanh.f32 %v1311_v31 }
 0x420   : >> { %v2062_v13 = vpop.eup %2061 }
 0x421   : >> { %v1205_v14 = vsel %vm1198_vm4, %v2062_v13, 0.0  ;;  %v2064_v61 = vpop.eup %2063 }
 0x422   : >> { %1206 = vadd.xlane.f32.xlu0 %v1205_v14  ;;  %v2066_v32 = vpop.eup %2065 }
 0x423   : >> { %v1901_v33 = vpack.c.bf16 %v2066_v32, %v2064_v61  ;;  %v2068_v34 = vpop.eup %2067 }
 0x424   : >> { %v2070_v35 = vpop.eup %2069 }
 0x425   : >> { %1902 = vmatpush3.bf16.msra.mxu1 %v1901_v33  ;;  %v1904_v36 = vpack.c.bf16 %v2070_v35, %v2068_v34  ;;  %v2072_v37 = vpop.eup %2071 }
 0x426   : >> { %1903 = vmatprep.subr.bf16.mxu1 %v2410_v53  ;;  %v2074_v38 = vpop.eup %2073 }
 0x427   : >> { %v1907_v63 = vpack.c.bf16 %v2074_v38, %v2072_v37 }
 0x429   : >> { %1905 = vmatpush3.bf16.msra.mxu1 %v1904_v36 }
 0x42a   : >> { %1906 = vmatprep.subr.bf16.mxu1 %v2410_v53 }
 0x42d   : >> { %1908 = vmatpush3.bf16.msra.mxu1 %v1907_v63 }
 0x42e   : >> { %1909 = vmatprep.subr.bf16.mxu1 %v2410_v53 }
 0x4af   : >> { %v1207_v39 = vpop.xlane.xlu0 %1206 }
 0x4b0   : >> { %2075 = vrcp.f32 %v1207_v39 }
 0x4ba   : >> { %v2076_v40 = vpop.eup %2075 }
 0x4bb   : >> { %v1209_v42 = vmul.f32 %v2076_v40, %v2062_v13 }
 0x4bd   : >> { %1844 = vmatmul.mubr.msk.f32.vlgmr.msra.gmra.mrb[0].mxu1 %vm1198_vm4, %v1209_v42 }
 0x4be   : >> { %1911 = vmatpush3.bf16.msra.mxu1 %v1910_v41  ;;  %1854 = vmatprep.mubr.msk.f32.mxu1 %vm2412_vm2, %v2413_v57 }
 0x4bf   : >> { %1912 = vmatprep.subr.bf16.mxu1 %v2410_v53 }
 0x4c2   : >> { %1914 = vmatpush3.bf16.msra.mxu1 %v1913_v43 }
 0x590   : >> { %v1389_v44 = vpop.f32.mrb[0].mxu1 }
 0x591   : >> { %v1845_v45 = vpop.f32.mrb[1].mxu1  ;;  %1855 = vmatmul.mubr.msk.f32.vlgmr.msra.gmra.mrb[2].mxu1 %vm597_vm0, %v1389_v44 }
 0x663   : > { %986 = sbr.rel (!%p984_p2) target bundleno = 626 (0x272), region = 171 }
 0x664   : >> { %v1464_v47 = vpop.f32.mrb[2].mxu1 }
 0x665   : >> { %v1468_v48 = vadd.f32 %v1464_v47, %v1394_v46  ;;  %v1856_v49 = vpop.f32.mrb[3].mxu1 }
 0x667   : >> { %v1469_v50 = vmax.f32 %v1468_v48, 0.0 }
 0x669   : >> { %1471 = vst.msk [vmem:[%s1470_s25] sm:$0xff] %vm597_vm0, %v1469_v50 }
 0x66a   : > { %2320 = shalt.err (!%p2317_p9)
}
 0x66b   : > { %s2321_s26 = scalar_lea.hbm %s2993_s12, 256  ;;  %s2325_s13 = scalar_lea.hbm %s3133_s27, 512 }
 0x66c   : > { %p2322_p11 = scmp.ne.s32.totalorder %s2993_s12, %s2321_s26  ;;  %p2326_p8 = scmp.lt.u32.totalorder %s2993_s12, %s3133_s27 }
 0x66d   : > { %p2327_p7 = scmp.lt.u32.totalorder %s2325_s13, %s2321_s26  ;;  %p2329_p3 = scmp.lt.u32.totalorder %s2321_s26, %s2993_s12 }
 0x66e   : > { %p2323_p13 = pnand %p2322_p11, %p3134_p12 }
 0x66f   : > { %p2328_p2 = por %p2327_p7, %p2326_p8 }
 0x670   : > { %p2324_p6 = pneg %p2323_p13 }
 0x671   : > { %p2330_p10 = por %p2329_p3, %p2328_p2 }
 0x673   : > { %p2331_p1 = pnand %p2330_p10, %p2324_p6 }
 0x675   : > { %2334 = shalt.err (!%p2331_p1)
}
 0x676   : > { %s2415_s21 = smov 128   ;;  %s2416_s1 = smov 8  }
 0x677   : > { %1941 = dma.vmem_to_hbm [thread:$0]  (%p3134_p12), %s2997_s17, 256, %s2993_s12, %s1473_s9, %s2415_s21, %s2415_s21, %s2416_s1  }
 0x678 PF: > { %s3135_s25 = sld [smem:[#allocation29_spill]]  ;;  %s3136_s20 = sld [smem:[#allocation35_spill]] }
 0x679   : > { %s3137_s19 = sld [smem:[#allocation30_spill]] }
 0x67e   : > { %s1501_s11 = sand.u32 1, %s3135_s25   ;;  %p3138_p5 = scmp.ne.s32.totalorder %s3136_s20, 0 }
 0x67f   : > { %p3139_p4 = scmp.ge.s32.totalorder %s3137_s19, 2  ;;  %s1502_s15 = scalar_lea.sflag [#allocation10], %s1501_s11 }
 0x681   : > { %p1970_p0 = pnand %p3139_p4, %p3138_p5 }
 0x683   : > { %2376 = dma.done.wait (!%p1970_p0), %s1502_s15, 256  }
 0x684   : > { %2378 = vsyncadd (!%p1970_p0), %s1502_s15, 4294967040  ;;  %s3140_s24 = sld [smem:[#allocation32_spill]]  ;;  %s3141_s16 = sld [smem:[#allocation34_spill]] }
 0x685   : > { %s3142_s21 = smov %s2385_s22  ;;  %s3143_s22 = smov %s2389_s23 }
 0x68a   : > { %p31_p9 = scmp.ge.s32.totalorder %s3140_s24, 4   ;;  %s3144_s23 = smov %s3141_s16 }
 0x68c   :  { %33 = sbr.rel (!%p31_p9) target bundleno = 19 (0x13), region = 182 }
 0x693   :  { %1507 = vsyncpa [#allocation9], 1 }
 0x694   :  { %1509 = vsyncpa [#allocation9 + $0x1], 1 }
 0x695   :  { %1510 = vsyncpa [#allocation12], 1 }
 0x696   :  { %1512 = vsyncpa [#allocation12 + $0x1], 1 }
 0x697   :  { %1513 = vsyncpa [#allocation15], 1 }
 0x698   :  { %1514 = vsyncpa [#allocation18], 1 }
 0x699   :  { %1515 = vsyncpa [#allocation21], 1 }
 0x69a   :  { %1516 = vsyncpa [#allocation10], 1 }
 0x69b   :  { %1518 = vsyncpa [#allocation10 + $0x1], 1 }

</bundles_post_ra>
